<compile_context>
chip_gen: v7x
topology: tpu7x:2x2x1
jax: 0.10.0
libtpu: 0.0.40
codegen_flags: <defaults>
</compile_context>

<pallas_src>
import math
from functools import partial

import jax
import jax.numpy as jnp
from jax import lax
from jax.experimental import pallas as pl
from jax.experimental.pallas import tpu as pltpu


def _layer_norm(x, g, b, eps=1e-12):
    mean = jnp.mean(x, axis=-1, keepdims=True)
    xc = x - mean
    var = jnp.mean(xc * xc, axis=-1, keepdims=True)
    return xc * lax.rsqrt(var + eps) * g + b


def _bert_lstm_kernel(x_ref, gvec_ref, lvec_ref, wqkv_ref, woh_ref, wi_ref,
                      wof_ref, wih_ref, whh_ref,
                      y_ref, hn_ref, cn_ref, *,
                      n_layers, n_heads, hidden, inter, seq):
    """One grid step == one batch element: full encoder + LSTM recurrence."""
    H, I, S = hidden, inter, seq
    dh = H // n_heads
    scale = 1.0 / math.sqrt(dh)
    bf16 = jnp.bfloat16

    gv = gvec_ref[...]                       # (3, 4H) packed: emb_g, emb_b, lstm_b
    emb_g = gv[0:1, :H]
    emb_b = gv[1:2, :H]
    lstm_b = gv[2:3, :4 * H]

    # ---- embedding LayerNorm (fused; no separate pallas_call) ----
    x = _layer_norm(x_ref[0], emb_g, emb_b)                      # (S, H) f32

    # ---- encoder layers (static unroll over n_layers) ----
    for l in range(n_layers):
        lv = lvec_ref[l]                                         # (8, VW) packed
        bqkv = lv[0:1, :3 * H]
        bo   = lv[1:2, :H]
        ln1g = lv[2:3, :H]
        ln1b = lv[3:4, :H]
        bi   = lv[4:5, :I]
        bo2  = lv[5:6, :H]
        ln2g = lv[6:7, :H]
        ln2b = lv[7:8, :H]

        # Fused QKV projection: one (S,H)@(H,3H) MXU call.
        qkv = jnp.dot(x.astype(bf16), wqkv_ref[l],
                      preferred_element_type=jnp.float32) + bqkv  # (S, 3H)

        # TODO(synk): no attention/padding mask applied (BertModel would honor one).
        # TODO(synk): at real S, switch to flash-style tiling with head-batched
        # (n_heads, S, dh) layout instead of the static per-head loop.
        attn = None
        for h in range(n_heads):
            qh = qkv[:, h * dh:(h + 1) * dh].astype(bf16)
            kh = qkv[:, H + h * dh:H + (h + 1) * dh].astype(bf16)
            vh = qkv[:, 2 * H + h * dh:2 * H + (h + 1) * dh].astype(bf16)
            s = lax.dot_general(qh, kh, (((1,), (1,)), ((), ())),
                                preferred_element_type=jnp.float32) * scale
            m = jnp.max(s, axis=-1, keepdims=True)
            p = jnp.exp(s - m)
            p = p * pl.reciprocal(jnp.sum(p, axis=-1, keepdims=True), approx=True)
            ctx_h = jnp.dot(p.astype(bf16), vh,
                            preferred_element_type=jnp.float32)   # (S, dh)
            # Fold the head straight into the output projection: no lane concat.
            part = jnp.dot(ctx_h.astype(bf16), woh_ref[l, h],
                           preferred_element_type=jnp.float32)    # (S, H)
            attn = part if attn is None else attn + part

        x = _layer_norm(attn + bo + x, ln1g, ln1b)

        # ---- FFN ----
        hmid = jnp.dot(x.astype(bf16), wi_ref[l],
                       preferred_element_type=jnp.float32) + bi   # (S, I)
        # TODO(synk): HF BERT uses exact erf GELU; tanh approximation used here.
        gact = 0.5 * hmid * (1.0 + jnp.tanh(
            0.7978845608028654 * (hmid + 0.044715 * hmid * hmid * hmid)))
        ffn = jnp.dot(gact.astype(bf16), wof_ref[l],
                      preferred_element_type=jnp.float32) + bo2
        x = _layer_norm(ffn + x, ln2g, ln2b)

    # ---- LSTM (single layer). Input projection fused here: one matmul for all
    #      S steps; the recurrence only does h@Whh + gate math per step with
    #      h/c carried in vregs (no VMEM scratch round-trips). ----
    gx = jnp.dot(x.astype(bf16), wih_ref[...],
                 preferred_element_type=jnp.float32) + lstm_b     # (S, 4H)
    whh = whh_ref[...]                                            # (H, 4H) bf16
    h = jnp.zeros((1, H), jnp.float32)
    c = jnp.zeros((1, H), jnp.float32)
    # TODO(synk): at realistic S use lax.fori_loop with bounded unroll (4-8) or
    # a time-chunk grid axis; full static unroll is right for S=8.
    # TODO(synk): Whh could be pinned in MXU weight regs across all steps via
    # pltpu.matmul_push_rhs / matmul_acc_lhs / matmul_pop.
    for t in range(S):
        gates = gx[t:t + 1, :] + jnp.dot(h.astype(bf16), whh,
                                         preferred_element_type=jnp.float32)
        i_g = jax.nn.sigmoid(gates[:, 0 * H:1 * H])   # PyTorch gate order i,f,g,o
        f_g = jax.nn.sigmoid(gates[:, 1 * H:2 * H])
        g_g = jnp.tanh(gates[:, 2 * H:3 * H])
        o_g = jax.nn.sigmoid(gates[:, 3 * H:4 * H])
        c = f_g * c + i_g * g_g
        h = o_g * jnp.tanh(c)
        y_ref[0, t:t + 1, :] = h
    hn_ref[0] = h
    cn_ref[0] = c


# ------------------------------ model glue ---------------------------------

def bert_lstm_forward(params, token_ids, *, n_heads):
    """Mirrors BertLstm.forward: x = bert(x)[0]; x = rnn(x); return x."""
    B, S = token_ids.shape
    H = params['word_emb'].shape[1]
    L = params['wqkv'].shape[0]
    I = params['wi'].shape[2]
    VW = params['lvec'].shape[2]
    dh = H // n_heads

    # TODO(synk): embedding gather stays in plain JAX (no clean tiny-scale Pallas gather).
    emb = (jnp.take(params['word_emb'], token_ids, axis=0)
           + params['pos_emb'][:S][None, :, :]
           + params['type_emb'][0][None, None, :])

    const2 = lambda b: (0, 0)
    const3 = lambda b: (0, 0, 0)
    const4 = lambda b: (0, 0, 0, 0)
    kernel = partial(_bert_lstm_kernel, n_layers=L, n_heads=n_heads,
                     hidden=H, inter=I, seq=S)

    # TODO(synk): outputs keep the true H=32 last dim (masked stores); at scale
    # pad hidden to a multiple of 128 for lane-dense vst / DMA.
    y, hn, cn = pl.pallas_call(
        kernel,
        out_shape=(jax.ShapeDtypeStruct((B, S, H), jnp.float32),
                   jax.ShapeDtypeStruct((B, 1, H), jnp.float32),
                   jax.ShapeDtypeStruct((B, 1, H), jnp.float32)),
        grid=(B,),
        in_specs=[
            pl.BlockSpec((1, S, H), lambda b: (b, 0, 0)),          # embeddings
            pl.BlockSpec((3, 4 * H), const2),                      # packed global vecs
            pl.BlockSpec((L, 8, VW), const3),                      # packed per-layer vecs
            pl.BlockSpec((L, H, 3 * H), const3),                   # fused QKV weights
            pl.BlockSpec((L, n_heads, dh, H), const4),             # Wo pre-split per head
            pl.BlockSpec((L, H, I), const3),                       # FFN in weights
            pl.BlockSpec((L, I, H), const3),                       # FFN out weights
            pl.BlockSpec((H, 4 * H), const2),                      # LSTM W_ih^T
            pl.BlockSpec((H, 4 * H), const2),                      # LSTM W_hh^T
        ],
        out_specs=(pl.BlockSpec((1, S, H), lambda b: (b, 0, 0)),
                   pl.BlockSpec((1, 1, H), lambda b: (b, 0, 0)),
                   pl.BlockSpec((1, 1, H), lambda b: (b, 0, 0))),
        compiler_params=pltpu.CompilerParams(
            dimension_semantics=("parallel",)),
    )(emb, params['gvec'], params['lvec'], params['wqkv'], params['wo_heads'],
      params['wi'], params['wo_ffn'], params['lstm_wih'], params['lstm_whh'])

    # nn.LSTM returns (output, (h_n, c_n)) with h_n/c_n shaped (1, B, H).
    return y, (jnp.transpose(hn, (1, 0, 2)), jnp.transpose(cn, (1, 0, 2)))


def init_params(key, vocab, max_pos, hidden, n_layers, n_heads, inter):
    H, I, L = hidden, inter, n_layers
    dh = H // n_heads
    VW = max(3 * H, I)
    keys = iter(jax.random.split(key, 64))
    bf16 = jnp.bfloat16

    def nrm(shape, scale=0.02, dtype=jnp.float32):
        return (scale * jax.random.normal(next(keys), shape)).astype(dtype)

    # Packed per-layer vector slab, rows:
    #  0 bqkv(3H) | 1 bo(H) | 2 ln1_g | 3 ln1_b | 4 bi(I) | 5 bo2(H) | 6 ln2_g | 7 ln2_b
    lvec = jnp.zeros((L, 8, VW), jnp.float32)
    wqkv, wo_heads, wi, wo_ffn = [], [], [], []
    for l in range(L):
        rows = [
            jnp.pad(nrm((3 * H,)), (0, VW - 3 * H)),
            jnp.pad(nrm((H,)), (0, VW - H)),
            jnp.pad(jnp.ones((H,), jnp.float32), (0, VW - H)),
            jnp.pad(jnp.zeros((H,), jnp.float32), (0, VW - H)),
            jnp.pad(nrm((I,)), (0, VW - I)),
            jnp.pad(nrm((H,)), (0, VW - H)),
            jnp.pad(jnp.ones((H,), jnp.float32), (0, VW - H)),
            jnp.pad(jnp.zeros((H,), jnp.float32), (0, VW - H)),
        ]
        lvec = lvec.at[l].set(jnp.stack(rows))
        wqkv.append(nrm((H, 3 * H), dtype=bf16))          # columns [Wq | Wk | Wv]
        wo_heads.append(nrm((n_heads, dh, H), dtype=bf16))  # Wo split by head rows
        wi.append(nrm((H, I), dtype=bf16))
        wo_ffn.append(nrm((I, H), dtype=bf16))

    # Packed global vector slab: emb_ln_g, emb_ln_b, lstm bias (= b_ih + b_hh).
    gvec = jnp.stack([
        jnp.pad(jnp.ones((H,), jnp.float32), (0, 4 * H - H)),
        jnp.pad(jnp.zeros((H,), jnp.float32), (0, 4 * H - H)),
        nrm((4 * H,), scale=0.1),
    ])

    return {
        'word_emb': nrm((vocab, H)),
        'pos_emb': nrm((max_pos, H)),
        'type_emb': nrm((2, H)),
        'gvec': gvec,
        'lvec': lvec,
        'wqkv': jnp.stack(wqkv),
        'wo_heads': jnp.stack(wo_heads),
        'wi': jnp.stack(wi),
        'wo_ffn': jnp.stack(wo_ffn),
        # LSTM weights stored pre-transposed as bf16 (H, 4H).
        'lstm_wih': nrm((H, 4 * H), scale=0.1, dtype=bf16),
        'lstm_whh': nrm((H, 4 * H), scale=0.1, dtype=bf16),
    }


if __name__ == "__main__":
    B, S = 2, 8
    HIDDEN, N_LAYERS, N_HEADS, INTER = 32, 2, 2, 64
    VOCAB, MAX_POS = 30, 16

    key = jax.random.PRNGKey(0)
    pkey, xkey = jax.random.split(key)
    params = init_params(pkey, VOCAB, MAX_POS, HIDDEN, N_LAYERS, N_HEADS, INTER)
    token_ids = jax.random.randint(xkey, (B, S), 0, VOCAB, dtype=jnp.int32)

    out, (h_n, c_n) = bert_lstm_forward(params, token_ids, n_heads=N_HEADS)
    jax.block_until_ready((out, h_n, c_n))

    assert out.shape == (B, S, HIDDEN)
    assert h_n.shape == (1, B, HIDDEN)
    assert c_n.shape == (1, B, HIDDEN)
    assert jnp.all(jnp.isfinite(out))
    assert jnp.all(jnp.isfinite(h_n)) and jnp.all(jnp.isfinite(c_n))
    print("KERNEL_OK")
</pallas_src>

<mosaic_0001>
module attributes {stable_mosaic.version = 11 : i64} {
  func.func @_bert_lstm_kernel(%arg0: i32, %arg1: memref<1x8x32xf32, #tpu.memory_space<vmem>>, %arg2: memref<3x128xf32, #tpu.memory_space<vmem>>, %arg3: memref<2x8x96xf32, #tpu.memory_space<vmem>>, %arg4: memref<2x32x96xbf16, #tpu.memory_space<vmem>>, %arg5: memref<2x2x16x32xbf16, #tpu.memory_space<vmem>>, %arg6: memref<2x32x64xbf16, #tpu.memory_space<vmem>>, %arg7: memref<2x64x32xbf16, #tpu.memory_space<vmem>>, %arg8: memref<32x128xbf16, #tpu.memory_space<vmem>>, %arg9: memref<32x128xbf16, #tpu.memory_space<vmem>>, %arg10: memref<1x8x32xf32, #tpu.memory_space<vmem>>, %arg11: memref<1x1x32xf32, #tpu.memory_space<vmem>>, %arg12: memref<1x1x32xf32, #tpu.memory_space<vmem>>) attributes {dimension_semantics = [#tpu.dimension_semantics<parallel>], iteration_bounds = array<i64: 2>, scalar_prefetch = 0 : i64, scratch_operands = 0 : i64, tpu.core_type = #tpu.core_type<tc>, window_params = [{transform_indices = @transform_0, window_bounds = array<i64: 1, 8, 32>}, {pipeline_mode = #tpu.pipeline_mode<synchronous>, transform_indices = @transform_1, window_bounds = array<i64: 3, 128>}, {pipeline_mode = #tpu.pipeline_mode<synchronous>, transform_indices = @transform_2, window_bounds = array<i64: 2, 8, 96>}, {pipeline_mode = #tpu.pipeline_mode<synchronous>, transform_indices = @transform_3, window_bounds = array<i64: 2, 32, 96>}, {pipeline_mode = #tpu.pipeline_mode<synchronous>, transform_indices = @transform_4, window_bounds = array<i64: 2, 2, 16, 32>}, {pipeline_mode = #tpu.pipeline_mode<synchronous>, transform_indices = @transform_5, window_bounds = array<i64: 2, 32, 64>}, {pipeline_mode = #tpu.pipeline_mode<synchronous>, transform_indices = @transform_6, window_bounds = array<i64: 2, 64, 32>}, {pipeline_mode = #tpu.pipeline_mode<synchronous>, transform_indices = @transform_7, window_bounds = array<i64: 32, 128>}, {pipeline_mode = #tpu.pipeline_mode<synchronous>, transform_indices = @transform_8, window_bounds = array<i64: 32, 128>}, {transform_indices = @transform_9, window_bounds = array<i64: 1, 8, 32>}, {transform_indices = @transform_10, window_bounds = array<i64: 1, 1, 32>}, {transform_indices = @transform_11, window_bounds = array<i64: 1, 1, 32>}]} {
    %c0 = arith.constant 0 : index
    %c0_0 = arith.constant 0 : index
    %0 = vector.load %arg2[%c0, %c0_0] : memref<3x128xf32, #tpu.memory_space<vmem>>, vector<3x128xf32>
    %1 = vector.extract_strided_slice %0 {offsets = [0, 0], sizes = [1, 32], strides = [1, 1]} : vector<3x128xf32> to vector<1x32xf32>
    %2 = vector.extract_strided_slice %0 {offsets = [1, 0], sizes = [1, 32], strides = [1, 1]} : vector<3x128xf32> to vector<1x32xf32>
    %3 = vector.extract_strided_slice %0 {offsets = [2, 0], sizes = [1, 128], strides = [1, 1]} : vector<3x128xf32> to vector<1x128xf32>
    %c0_1 = arith.constant 0 : index
    %c0_2 = arith.constant 0 : index
    %c0_3 = arith.constant 0 : index
    %4 = vector.load %arg1[%c0_1, %c0_2, %c0_3] : memref<1x8x32xf32, #tpu.memory_space<vmem>>, vector<1x8x32xf32>
    %5 = vector.shape_cast %4 : vector<1x8x32xf32> to vector<8x32xf32>
    %cst = arith.constant dense<0.000000e+00> : vector<8xf32>
    %6 = vector.multi_reduction <add>, %5, %cst [1] : vector<8x32xf32> to vector<8xf32>
    %7 = vector.shape_cast %6 : vector<8xf32> to vector<8x1xf32>
    %cst_4 = arith.constant 3.200000e+01 : f32
    %8 = vector.broadcast %cst_4 : f32 to vector<8x1xf32>
    %9 = arith.divf %7, %8 : vector<8x1xf32>
    %10 = vector.broadcast %9 : vector<8x1xf32> to vector<8x32xf32>
    %11 = arith.subf %5, %10 : vector<8x32xf32>
    %12 = arith.mulf %11, %11 : vector<8x32xf32>
    %cst_5 = arith.constant dense<0.000000e+00> : vector<8xf32>
    %13 = vector.multi_reduction <add>, %12, %cst_5 [1] : vector<8x32xf32> to vector<8xf32>
    %14 = vector.shape_cast %13 : vector<8xf32> to vector<8x1xf32>
    %cst_6 = arith.constant 3.200000e+01 : f32
    %15 = vector.broadcast %cst_6 : f32 to vector<8x1xf32>
    %16 = arith.divf %14, %15 : vector<8x1xf32>
    %cst_7 = arith.constant 9.99999996E-13 : f32
    %17 = vector.broadcast %cst_7 : f32 to vector<8x1xf32>
    %18 = arith.addf %16, %17 : vector<8x1xf32>
    %19 = math.rsqrt %18 : vector<8x1xf32>
    %20 = vector.broadcast %19 : vector<8x1xf32> to vector<8x32xf32>
    %21 = arith.mulf %11, %20 : vector<8x32xf32>
    %22 = vector.broadcast %1 : vector<1x32xf32> to vector<8x32xf32>
    %23 = arith.mulf %21, %22 : vector<8x32xf32>
    %24 = vector.broadcast %2 : vector<1x32xf32> to vector<8x32xf32>
    %25 = arith.addf %23, %24 : vector<8x32xf32>
    %c0_8 = arith.constant 0 : index
    %c0_9 = arith.constant 0 : index
    %c0_10 = arith.constant 0 : index
    %26 = vector.load %arg3[%c0_8, %c0_9, %c0_10] : memref<2x8x96xf32, #tpu.memory_space<vmem>>, vector<1x8x96xf32>
    %27 = vector.shape_cast %26 : vector<1x8x96xf32> to vector<8x96xf32>
    %28 = vector.extract_strided_slice %27 {offsets = [0, 0], sizes = [1, 96], strides = [1, 1]} : vector<8x96xf32> to vector<1x96xf32>
    %29 = vector.extract_strided_slice %27 {offsets = [1, 0], sizes = [1, 32], strides = [1, 1]} : vector<8x96xf32> to vector<1x32xf32>
    %30 = vector.extract_strided_slice %27 {offsets = [2, 0], sizes = [1, 32], strides = [1, 1]} : vector<8x96xf32> to vector<1x32xf32>
    %31 = vector.extract_strided_slice %27 {offsets = [3, 0], sizes = [1, 32], strides = [1, 1]} : vector<8x96xf32> to vector<1x32xf32>
    %32 = vector.extract_strided_slice %27 {offsets = [4, 0], sizes = [1, 64], strides = [1, 1]} : vector<8x96xf32> to vector<1x64xf32>
    %33 = vector.extract_strided_slice %27 {offsets = [5, 0], sizes = [1, 32], strides = [1, 1]} : vector<8x96xf32> to vector<1x32xf32>
    %34 = vector.extract_strided_slice %27 {offsets = [6, 0], sizes = [1, 32], strides = [1, 1]} : vector<8x96xf32> to vector<1x32xf32>
    %35 = vector.extract_strided_slice %27 {offsets = [7, 0], sizes = [1, 32], strides = [1, 1]} : vector<8x96xf32> to vector<1x32xf32>
    %36 = arith.truncf %25 : vector<8x32xf32> to vector<8x32xbf16>
    %c0_11 = arith.constant 0 : index
    %c0_12 = arith.constant 0 : index
    %c0_13 = arith.constant 0 : index
    %37 = vector.load %arg4[%c0_11, %c0_12, %c0_13] : memref<2x32x96xbf16, #tpu.memory_space<vmem>>, vector<1x32x96xbf16>
    %38 = vector.shape_cast %37 : vector<1x32x96xbf16> to vector<32x96xbf16>
    %cst_14 = arith.constant dense<0.000000e+00> : vector<8x96xf32>
    %39 = tpu.matmul %36, %38, %cst_14 {dimension_numbers = #tpu.dot_dimension_numbers<[1], [0], [0], [1], [0, 0, 1, 1], [], []>} : vector<8x32xbf16>, vector<32x96xbf16>, vector<8x96xf32> -> vector<8x96xf32>
    %40 = vector.broadcast %28 : vector<1x96xf32> to vector<8x96xf32>
    %41 = arith.addf %39, %40 : vector<8x96xf32>
    %42 = vector.extract_strided_slice %41 {offsets = [0, 0], sizes = [8, 16], strides = [1, 1]} : vector<8x96xf32> to vector<8x16xf32>
    %43 = arith.truncf %42 : vector<8x16xf32> to vector<8x16xbf16>
    %44 = vector.extract_strided_slice %41 {offsets = [0, 32], sizes = [8, 16], strides = [1, 1]} : vector<8x96xf32> to vector<8x16xf32>
    %45 = arith.truncf %44 : vector<8x16xf32> to vector<8x16xbf16>
    %46 = vector.extract_strided_slice %41 {offsets = [0, 64], sizes = [8, 16], strides = [1, 1]} : vector<8x96xf32> to vector<8x16xf32>
    %47 = arith.truncf %46 : vector<8x16xf32> to vector<8x16xbf16>
    %cst_15 = arith.constant dense<0.000000e+00> : vector<8x8xf32>
    %48 = tpu.matmul %43, %45, %cst_15 {dimension_numbers = #tpu.dot_dimension_numbers<[1], [1], [0], [0], [0, 0, 1, 0], [], []>} : vector<8x16xbf16>, vector<8x16xbf16>, vector<8x8xf32> -> vector<8x8xf32>
    %cst_16 = arith.constant 2.500000e-01 : f32
    %49 = vector.broadcast %cst_16 : f32 to vector<8x8xf32>
    %50 = arith.mulf %48, %49 : vector<8x8xf32>
    %cst_17 = arith.constant dense<0xFF800000> : vector<8xf32>
    %51 = vector.multi_reduction <maximumf>, %50, %cst_17 [1] : vector<8x8xf32> to vector<8xf32>
    %52 = vector.shape_cast %51 : vector<8xf32> to vector<8x1xf32>
    %53 = vector.broadcast %52 : vector<8x1xf32> to vector<8x8xf32>
    %54 = arith.subf %50, %53 : vector<8x8xf32>
    %55 = math.exp %54 : vector<8x8xf32>
    %cst_18 = arith.constant dense<0.000000e+00> : vector<8xf32>
    %56 = vector.multi_reduction <add>, %55, %cst_18 [1] : vector<8x8xf32> to vector<8xf32>
    %57 = vector.shape_cast %56 : vector<8xf32> to vector<8x1xf32>
    %58 = tpu.reciprocal %57 {approx = true} : vector<8x1xf32> -> vector<8x1xf32>
    %59 = vector.broadcast %58 : vector<8x1xf32> to vector<8x8xf32>
    %60 = arith.mulf %55, %59 : vector<8x8xf32>
    %61 = arith.truncf %60 : vector<8x8xf32> to vector<8x8xbf16>
    %cst_19 = arith.constant dense<0.000000e+00> : vector<8x16xf32>
    %62 = tpu.matmul %61, %47, %cst_19 {dimension_numbers = #tpu.dot_dimension_numbers<[1], [0], [0], [1], [0, 0, 1, 1], [], []>} : vector<8x8xbf16>, vector<8x16xbf16>, vector<8x16xf32> -> vector<8x16xf32>
    %63 = arith.truncf %62 : vector<8x16xf32> to vector<8x16xbf16>
    %c0_20 = arith.constant 0 : index
    %c0_21 = arith.constant 0 : index
    %c0_22 = arith.constant 0 : index
    %c0_23 = arith.constant 0 : index
    %64 = vector.load %arg5[%c0_20, %c0_21, %c0_22, %c0_23] : memref<2x2x16x32xbf16, #tpu.memory_space<vmem>>, vector<1x1x16x32xbf16>
    %65 = vector.shape_cast %64 : vector<1x1x16x32xbf16> to vector<16x32xbf16>
    %cst_24 = arith.constant dense<0.000000e+00> : vector<8x32xf32>
    %66 = tpu.matmul %63, %65, %cst_24 {dimension_numbers = #tpu.dot_dimension_numbers<[1], [0], [0], [1], [0, 0, 1, 1], [], []>} : vector<8x16xbf16>, vector<16x32xbf16>, vector<8x32xf32> -> vector<8x32xf32>
    %67 = vector.extract_strided_slice %41 {offsets = [0, 16], sizes = [8, 16], strides = [1, 1]} : vector<8x96xf32> to vector<8x16xf32>
    %68 = arith.truncf %67 : vector<8x16xf32> to vector<8x16xbf16>
    %69 = vector.extract_strided_slice %41 {offsets = [0, 48], sizes = [8, 16], strides = [1, 1]} : vector<8x96xf32> to vector<8x16xf32>
    %70 = arith.truncf %69 : vector<8x16xf32> to vector<8x16xbf16>
    %71 = vector.extract_strided_slice %41 {offsets = [0, 80], sizes = [8, 16], strides = [1, 1]} : vector<8x96xf32> to vector<8x16xf32>
    %72 = arith.truncf %71 : vector<8x16xf32> to vector<8x16xbf16>
    %cst_25 = arith.constant dense<0.000000e+00> : vector<8x8xf32>
    %73 = tpu.matmul %68, %70, %cst_25 {dimension_numbers = #tpu.dot_dimension_numbers<[1], [1], [0], [0], [0, 0, 1, 0], [], []>} : vector<8x16xbf16>, vector<8x16xbf16>, vector<8x8xf32> -> vector<8x8xf32>
    %cst_26 = arith.constant 2.500000e-01 : f32
    %74 = vector.broadcast %cst_26 : f32 to vector<8x8xf32>
    %75 = arith.mulf %73, %74 : vector<8x8xf32>
    %cst_27 = arith.constant dense<0xFF800000> : vector<8xf32>
    %76 = vector.multi_reduction <maximumf>, %75, %cst_27 [1] : vector<8x8xf32> to vector<8xf32>
    %77 = vector.shape_cast %76 : vector<8xf32> to vector<8x1xf32>
    %78 = vector.broadcast %77 : vector<8x1xf32> to vector<8x8xf32>
    %79 = arith.subf %75, %78 : vector<8x8xf32>
    %80 = math.exp %79 : vector<8x8xf32>
    %cst_28 = arith.constant dense<0.000000e+00> : vector<8xf32>
    %81 = vector.multi_reduction <add>, %80, %cst_28 [1] : vector<8x8xf32> to vector<8xf32>
    %82 = vector.shape_cast %81 : vector<8xf32> to vector<8x1xf32>
    %83 = tpu.reciprocal %82 {approx = true} : vector<8x1xf32> -> vector<8x1xf32>
    %84 = vector.broadcast %83 : vector<8x1xf32> to vector<8x8xf32>
    %85 = arith.mulf %80, %84 : vector<8x8xf32>
    %86 = arith.truncf %85 : vector<8x8xf32> to vector<8x8xbf16>
    %cst_29 = arith.constant dense<0.000000e+00> : vector<8x16xf32>
    %87 = tpu.matmul %86, %72, %cst_29 {dimension_numbers = #tpu.dot_dimension_numbers<[1], [0], [0], [1], [0, 0, 1, 1], [], []>} : vector<8x8xbf16>, vector<8x16xbf16>, vector<8x16xf32> -> vector<8x16xf32>
    %88 = arith.truncf %87 : vector<8x16xf32> to vector<8x16xbf16>
    %c0_30 = arith.constant 0 : index
    %c1 = arith.constant 1 : index
    %c0_31 = arith.constant 0 : index
    %c0_32 = arith.constant 0 : index
    %89 = vector.load %arg5[%c0_30, %c1, %c0_31, %c0_32] : memref<2x2x16x32xbf16, #tpu.memory_space<vmem>>, vector<1x1x16x32xbf16>
    %90 = vector.shape_cast %89 : vector<1x1x16x32xbf16> to vector<16x32xbf16>
    %cst_33 = arith.constant dense<0.000000e+00> : vector<8x32xf32>
    %91 = tpu.matmul %88, %90, %cst_33 {dimension_numbers = #tpu.dot_dimension_numbers<[1], [0], [0], [1], [0, 0, 1, 1], [], []>} : vector<8x16xbf16>, vector<16x32xbf16>, vector<8x32xf32> -> vector<8x32xf32>
    %92 = arith.addf %66, %91 : vector<8x32xf32>
    %93 = vector.broadcast %29 : vector<1x32xf32> to vector<8x32xf32>
    %94 = arith.addf %92, %93 : vector<8x32xf32>
    %95 = arith.addf %94, %25 : vector<8x32xf32>
    %cst_34 = arith.constant dense<0.000000e+00> : vector<8xf32>
    %96 = vector.multi_reduction <add>, %95, %cst_34 [1] : vector<8x32xf32> to vector<8xf32>
    %97 = vector.shape_cast %96 : vector<8xf32> to vector<8x1xf32>
    %cst_35 = arith.constant 3.200000e+01 : f32
    %98 = vector.broadcast %cst_35 : f32 to vector<8x1xf32>
    %99 = arith.divf %97, %98 : vector<8x1xf32>
    %100 = vector.broadcast %99 : vector<8x1xf32> to vector<8x32xf32>
    %101 = arith.subf %95, %100 : vector<8x32xf32>
    %102 = arith.mulf %101, %101 : vector<8x32xf32>
    %cst_36 = arith.constant dense<0.000000e+00> : vector<8xf32>
    %103 = vector.multi_reduction <add>, %102, %cst_36 [1] : vector<8x32xf32> to vector<8xf32>
    %104 = vector.shape_cast %103 : vector<8xf32> to vector<8x1xf32>
    %cst_37 = arith.constant 3.200000e+01 : f32
    %105 = vector.broadcast %cst_37 : f32 to vector<8x1xf32>
    %106 = arith.divf %104, %105 : vector<8x1xf32>
    %cst_38 = arith.constant 9.99999996E-13 : f32
    %107 = vector.broadcast %cst_38 : f32 to vector<8x1xf32>
    %108 = arith.addf %106, %107 : vector<8x1xf32>
    %109 = math.rsqrt %108 : vector<8x1xf32>
    %110 = vector.broadcast %109 : vector<8x1xf32> to vector<8x32xf32>
    %111 = arith.mulf %101, %110 : vector<8x32xf32>
    %112 = vector.broadcast %30 : vector<1x32xf32> to vector<8x32xf32>
    %113 = arith.mulf %111, %112 : vector<8x32xf32>
    %114 = vector.broadcast %31 : vector<1x32xf32> to vector<8x32xf32>
    %115 = arith.addf %113, %114 : vector<8x32xf32>
    %116 = arith.truncf %115 : vector<8x32xf32> to vector<8x32xbf16>
    %c0_39 = arith.constant 0 : index
    %c0_40 = arith.constant 0 : index
    %c0_41 = arith.constant 0 : index
    %117 = vector.load %arg6[%c0_39, %c0_40, %c0_41] : memref<2x32x64xbf16, #tpu.memory_space<vmem>>, vector<1x32x64xbf16>
    %118 = vector.shape_cast %117 : vector<1x32x64xbf16> to vector<32x64xbf16>
    %cst_42 = arith.constant dense<0.000000e+00> : vector<8x64xf32>
    %119 = tpu.matmul %116, %118, %cst_42 {dimension_numbers = #tpu.dot_dimension_numbers<[1], [0], [0], [1], [0, 0, 1, 1], [], []>} : vector<8x32xbf16>, vector<32x64xbf16>, vector<8x64xf32> -> vector<8x64xf32>
    %120 = vector.broadcast %32 : vector<1x64xf32> to vector<8x64xf32>
    %121 = arith.addf %119, %120 : vector<8x64xf32>
    %cst_43 = arith.constant 5.000000e-01 : f32
    %122 = vector.broadcast %cst_43 : f32 to vector<8x64xf32>
    %123 = arith.mulf %122, %121 : vector<8x64xf32>
    %cst_44 = arith.constant 4.471500e-02 : f32
    %124 = vector.broadcast %cst_44 : f32 to vector<8x64xf32>
    %125 = arith.mulf %124, %121 : vector<8x64xf32>
    %126 = arith.mulf %125, %121 : vector<8x64xf32>
    %127 = arith.mulf %126, %121 : vector<8x64xf32>
    %128 = arith.addf %121, %127 : vector<8x64xf32>
    %cst_45 = arith.constant 0.797884583 : f32
    %129 = vector.broadcast %cst_45 : f32 to vector<8x64xf32>
    %130 = arith.mulf %129, %128 : vector<8x64xf32>
    %131 = math.tanh %130 : vector<8x64xf32>
    %cst_46 = arith.constant 1.000000e+00 : f32
    %132 = vector.broadcast %cst_46 : f32 to vector<8x64xf32>
    %133 = arith.addf %132, %131 : vector<8x64xf32>
    %134 = arith.mulf %123, %133 : vector<8x64xf32>
    %135 = arith.truncf %134 : vector<8x64xf32> to vector<8x64xbf16>
    %c0_47 = arith.constant 0 : index
    %c0_48 = arith.constant 0 : index
    %c0_49 = arith.constant 0 : index
    %136 = vector.load %arg7[%c0_47, %c0_48, %c0_49] : memref<2x64x32xbf16, #tpu.memory_space<vmem>>, vector<1x64x32xbf16>
    %137 = vector.shape_cast %136 : vector<1x64x32xbf16> to vector<64x32xbf16>
    %cst_50 = arith.constant dense<0.000000e+00> : vector<8x32xf32>
    %138 = tpu.matmul %135, %137, %cst_50 {dimension_numbers = #tpu.dot_dimension_numbers<[1], [0], [0], [1], [0, 0, 1, 1], [], []>} : vector<8x64xbf16>, vector<64x32xbf16>, vector<8x32xf32> -> vector<8x32xf32>
    %139 = vector.broadcast %33 : vector<1x32xf32> to vector<8x32xf32>
    %140 = arith.addf %138, %139 : vector<8x32xf32>
    %141 = arith.addf %140, %115 : vector<8x32xf32>
    %cst_51 = arith.constant dense<0.000000e+00> : vector<8xf32>
    %142 = vector.multi_reduction <add>, %141, %cst_51 [1] : vector<8x32xf32> to vector<8xf32>
    %143 = vector.shape_cast %142 : vector<8xf32> to vector<8x1xf32>
    %cst_52 = arith.constant 3.200000e+01 : f32
    %144 = vector.broadcast %cst_52 : f32 to vector<8x1xf32>
    %145 = arith.divf %143, %144 : vector<8x1xf32>
    %146 = vector.broadcast %145 : vector<8x1xf32> to vector<8x32xf32>
    %147 = arith.subf %141, %146 : vector<8x32xf32>
    %148 = arith.mulf %147, %147 : vector<8x32xf32>
    %cst_53 = arith.constant dense<0.000000e+00> : vector<8xf32>
    %149 = vector.multi_reduction <add>, %148, %cst_53 [1] : vector<8x32xf32> to vector<8xf32>
    %150 = vector.shape_cast %149 : vector<8xf32> to vector<8x1xf32>
    %cst_54 = arith.constant 3.200000e+01 : f32
    %151 = vector.broadcast %cst_54 : f32 to vector<8x1xf32>
    %152 = arith.divf %150, %151 : vector<8x1xf32>
    %cst_55 = arith.constant 9.99999996E-13 : f32
    %153 = vector.broadcast %cst_55 : f32 to vector<8x1xf32>
    %154 = arith.addf %152, %153 : vector<8x1xf32>
    %155 = math.rsqrt %154 : vector<8x1xf32>
    %156 = vector.broadcast %155 : vector<8x1xf32> to vector<8x32xf32>
    %157 = arith.mulf %147, %156 : vector<8x32xf32>
    %158 = vector.broadcast %34 : vector<1x32xf32> to vector<8x32xf32>
    %159 = arith.mulf %157, %158 : vector<8x32xf32>
    %160 = vector.broadcast %35 : vector<1x32xf32> to vector<8x32xf32>
    %161 = arith.addf %159, %160 : vector<8x32xf32>
    %c1_56 = arith.constant 1 : index
    %c0_57 = arith.constant 0 : index
    %c0_58 = arith.constant 0 : index
    %162 = vector.load %arg3[%c1_56, %c0_57, %c0_58] : memref<2x8x96xf32, #tpu.memory_space<vmem>>, vector<1x8x96xf32>
    %163 = vector.shape_cast %162 : vector<1x8x96xf32> to vector<8x96xf32>
    %164 = vector.extract_strided_slice %163 {offsets = [0, 0], sizes = [1, 96], strides = [1, 1]} : vector<8x96xf32> to vector<1x96xf32>
    %165 = vector.extract_strided_slice %163 {offsets = [1, 0], sizes = [1, 32], strides = [1, 1]} : vector<8x96xf32> to vector<1x32xf32>
    %166 = vector.extract_strided_slice %163 {offsets = [2, 0], sizes = [1, 32], strides = [1, 1]} : vector<8x96xf32> to vector<1x32xf32>
    %167 = vector.extract_strided_slice %163 {offsets = [3, 0], sizes = [1, 32], strides = [1, 1]} : vector<8x96xf32> to vector<1x32xf32>
    %168 = vector.extract_strided_slice %163 {offsets = [4, 0], sizes = [1, 64], strides = [1, 1]} : vector<8x96xf32> to vector<1x64xf32>
    %169 = vector.extract_strided_slice %163 {offsets = [5, 0], sizes = [1, 32], strides = [1, 1]} : vector<8x96xf32> to vector<1x32xf32>
    %170 = vector.extract_strided_slice %163 {offsets = [6, 0], sizes = [1, 32], strides = [1, 1]} : vector<8x96xf32> to vector<1x32xf32>
    %171 = vector.extract_strided_slice %163 {offsets = [7, 0], sizes = [1, 32], strides = [1, 1]} : vector<8x96xf32> to vector<1x32xf32>
    %172 = arith.truncf %161 : vector<8x32xf32> to vector<8x32xbf16>
    %c1_59 = arith.constant 1 : index
    %c0_60 = arith.constant 0 : index
    %c0_61 = arith.constant 0 : index
    %173 = vector.load %arg4[%c1_59, %c0_60, %c0_61] : memref<2x32x96xbf16, #tpu.memory_space<vmem>>, vector<1x32x96xbf16>
    %174 = vector.shape_cast %173 : vector<1x32x96xbf16> to vector<32x96xbf16>
    %cst_62 = arith.constant dense<0.000000e+00> : vector<8x96xf32>
    %175 = tpu.matmul %172, %174, %cst_62 {dimension_numbers = #tpu.dot_dimension_numbers<[1], [0], [0], [1], [0, 0, 1, 1], [], []>} : vector<8x32xbf16>, vector<32x96xbf16>, vector<8x96xf32> -> vector<8x96xf32>
    %176 = vector.broadcast %164 : vector<1x96xf32> to vector<8x96xf32>
    %177 = arith.addf %175, %176 : vector<8x96xf32>
    %178 = vector.extract_strided_slice %177 {offsets = [0, 0], sizes = [8, 16], strides = [1, 1]} : vector<8x96xf32> to vector<8x16xf32>
    %179 = arith.truncf %178 : vector<8x16xf32> to vector<8x16xbf16>
    %180 = vector.extract_strided_slice %177 {offsets = [0, 32], sizes = [8, 16], strides = [1, 1]} : vector<8x96xf32> to vector<8x16xf32>
    %181 = arith.truncf %180 : vector<8x16xf32> to vector<8x16xbf16>
    %182 = vector.extract_strided_slice %177 {offsets = [0, 64], sizes = [8, 16], strides = [1, 1]} : vector<8x96xf32> to vector<8x16xf32>
    %183 = arith.truncf %182 : vector<8x16xf32> to vector<8x16xbf16>
    %cst_63 = arith.constant dense<0.000000e+00> : vector<8x8xf32>
    %184 = tpu.matmul %179, %181, %cst_63 {dimension_numbers = #tpu.dot_dimension_numbers<[1], [1], [0], [0], [0, 0, 1, 0], [], []>} : vector<8x16xbf16>, vector<8x16xbf16>, vector<8x8xf32> -> vector<8x8xf32>
    %cst_64 = arith.constant 2.500000e-01 : f32
    %185 = vector.broadcast %cst_64 : f32 to vector<8x8xf32>
    %186 = arith.mulf %184, %185 : vector<8x8xf32>
    %cst_65 = arith.constant dense<0xFF800000> : vector<8xf32>
    %187 = vector.multi_reduction <maximumf>, %186, %cst_65 [1] : vector<8x8xf32> to vector<8xf32>
    %188 = vector.shape_cast %187 : vector<8xf32> to vector<8x1xf32>
    %189 = vector.broadcast %188 : vector<8x1xf32> to vector<8x8xf32>
    %190 = arith.subf %186, %189 : vector<8x8xf32>
    %191 = math.exp %190 : vector<8x8xf32>
    %cst_66 = arith.constant dense<0.000000e+00> : vector<8xf32>
    %192 = vector.multi_reduction <add>, %191, %cst_66 [1] : vector<8x8xf32> to vector<8xf32>
    %193 = vector.shape_cast %192 : vector<8xf32> to vector<8x1xf32>
    %194 = tpu.reciprocal %193 {approx = true} : vector<8x1xf32> -> vector<8x1xf32>
    %195 = vector.broadcast %194 : vector<8x1xf32> to vector<8x8xf32>
    %196 = arith.mulf %191, %195 : vector<8x8xf32>
    %197 = arith.truncf %196 : vector<8x8xf32> to vector<8x8xbf16>
    %cst_67 = arith.constant dense<0.000000e+00> : vector<8x16xf32>
    %198 = tpu.matmul %197, %183, %cst_67 {dimension_numbers = #tpu.dot_dimension_numbers<[1], [0], [0], [1], [0, 0, 1, 1], [], []>} : vector<8x8xbf16>, vector<8x16xbf16>, vector<8x16xf32> -> vector<8x16xf32>
    %199 = arith.truncf %198 : vector<8x16xf32> to vector<8x16xbf16>
    %c1_68 = arith.constant 1 : index
    %c0_69 = arith.constant 0 : index
    %c0_70 = arith.constant 0 : index
    %c0_71 = arith.constant 0 : index
    %200 = vector.load %arg5[%c1_68, %c0_69, %c0_70, %c0_71] : memref<2x2x16x32xbf16, #tpu.memory_space<vmem>>, vector<1x1x16x32xbf16>
    %201 = vector.shape_cast %200 : vector<1x1x16x32xbf16> to vector<16x32xbf16>
    %cst_72 = arith.constant dense<0.000000e+00> : vector<8x32xf32>
    %202 = tpu.matmul %199, %201, %cst_72 {dimension_numbers = #tpu.dot_dimension_numbers<[1], [0], [0], [1], [0, 0, 1, 1], [], []>} : vector<8x16xbf16>, vector<16x32xbf16>, vector<8x32xf32> -> vector<8x32xf32>
    %203 = vector.extract_strided_slice %177 {offsets = [0, 16], sizes = [8, 16], strides = [1, 1]} : vector<8x96xf32> to vector<8x16xf32>
    %204 = arith.truncf %203 : vector<8x16xf32> to vector<8x16xbf16>
    %205 = vector.extract_strided_slice %177 {offsets = [0, 48], sizes = [8, 16], strides = [1, 1]} : vector<8x96xf32> to vector<8x16xf32>
    %206 = arith.truncf %205 : vector<8x16xf32> to vector<8x16xbf16>
    %207 = vector.extract_strided_slice %177 {offsets = [0, 80], sizes = [8, 16], strides = [1, 1]} : vector<8x96xf32> to vector<8x16xf32>
    %208 = arith.truncf %207 : vector<8x16xf32> to vector<8x16xbf16>
    %cst_73 = arith.constant dense<0.000000e+00> : vector<8x8xf32>
    %209 = tpu.matmul %204, %206, %cst_73 {dimension_numbers = #tpu.dot_dimension_numbers<[1], [1], [0], [0], [0, 0, 1, 0], [], []>} : vector<8x16xbf16>, vector<8x16xbf16>, vector<8x8xf32> -> vector<8x8xf32>
    %cst_74 = arith.constant 2.500000e-01 : f32
    %210 = vector.broadcast %cst_74 : f32 to vector<8x8xf32>
    %211 = arith.mulf %209, %210 : vector<8x8xf32>
    %cst_75 = arith.constant dense<0xFF800000> : vector<8xf32>
    %212 = vector.multi_reduction <maximumf>, %211, %cst_75 [1] : vector<8x8xf32> to vector<8xf32>
    %213 = vector.shape_cast %212 : vector<8xf32> to vector<8x1xf32>
    %214 = vector.broadcast %213 : vector<8x1xf32> to vector<8x8xf32>
    %215 = arith.subf %211, %214 : vector<8x8xf32>
    %216 = math.exp %215 : vector<8x8xf32>
    %cst_76 = arith.constant dense<0.000000e+00> : vector<8xf32>
    %217 = vector.multi_reduction <add>, %216, %cst_76 [1] : vector<8x8xf32> to vector<8xf32>
    %218 = vector.shape_cast %217 : vector<8xf32> to vector<8x1xf32>
    %219 = tpu.reciprocal %218 {approx = true} : vector<8x1xf32> -> vector<8x1xf32>
    %220 = vector.broadcast %219 : vector<8x1xf32> to vector<8x8xf32>
    %221 = arith.mulf %216, %220 : vector<8x8xf32>
    %222 = arith.truncf %221 : vector<8x8xf32> to vector<8x8xbf16>
    %cst_77 = arith.constant dense<0.000000e+00> : vector<8x16xf32>
    %223 = tpu.matmul %222, %208, %cst_77 {dimension_numbers = #tpu.dot_dimension_numbers<[1], [0], [0], [1], [0, 0, 1, 1], [], []>} : vector<8x8xbf16>, vector<8x16xbf16>, vector<8x16xf32> -> vector<8x16xf32>
    %224 = arith.truncf %223 : vector<8x16xf32> to vector<8x16xbf16>
    %c1_78 = arith.constant 1 : index
    %c1_79 = arith.constant 1 : index
    %c0_80 = arith.constant 0 : index
    %c0_81 = arith.constant 0 : index
    %225 = vector.load %arg5[%c1_78, %c1_79, %c0_80, %c0_81] : memref<2x2x16x32xbf16, #tpu.memory_space<vmem>>, vector<1x1x16x32xbf16>
    %226 = vector.shape_cast %225 : vector<1x1x16x32xbf16> to vector<16x32xbf16>
    %cst_82 = arith.constant dense<0.000000e+00> : vector<8x32xf32>
    %227 = tpu.matmul %224, %226, %cst_82 {dimension_numbers = #tpu.dot_dimension_numbers<[1], [0], [0], [1], [0, 0, 1, 1], [], []>} : vector<8x16xbf16>, vector<16x32xbf16>, vector<8x32xf32> -> vector<8x32xf32>
    %228 = arith.addf %202, %227 : vector<8x32xf32>
    %229 = vector.broadcast %165 : vector<1x32xf32> to vector<8x32xf32>
    %230 = arith.addf %228, %229 : vector<8x32xf32>
    %231 = arith.addf %230, %161 : vector<8x32xf32>
    %cst_83 = arith.constant dense<0.000000e+00> : vector<8xf32>
    %232 = vector.multi_reduction <add>, %231, %cst_83 [1] : vector<8x32xf32> to vector<8xf32>
    %233 = vector.shape_cast %232 : vector<8xf32> to vector<8x1xf32>
    %cst_84 = arith.constant 3.200000e+01 : f32
    %234 = vector.broadcast %cst_84 : f32 to vector<8x1xf32>
    %235 = arith.divf %233, %234 : vector<8x1xf32>
    %236 = vector.broadcast %235 : vector<8x1xf32> to vector<8x32xf32>
    %237 = arith.subf %231, %236 : vector<8x32xf32>
    %238 = arith.mulf %237, %237 : vector<8x32xf32>
    %cst_85 = arith.constant dense<0.000000e+00> : vector<8xf32>
    %239 = vector.multi_reduction <add>, %238, %cst_85 [1] : vector<8x32xf32> to vector<8xf32>
    %240 = vector.shape_cast %239 : vector<8xf32> to vector<8x1xf32>
    %cst_86 = arith.constant 3.200000e+01 : f32
    %241 = vector.broadcast %cst_86 : f32 to vector<8x1xf32>
    %242 = arith.divf %240, %241 : vector<8x1xf32>
    %cst_87 = arith.constant 9.99999996E-13 : f32
    %243 = vector.broadcast %cst_87 : f32 to vector<8x1xf32>
    %244 = arith.addf %242, %243 : vector<8x1xf32>
    %245 = math.rsqrt %244 : vector<8x1xf32>
    %246 = vector.broadcast %245 : vector<8x1xf32> to vector<8x32xf32>
    %247 = arith.mulf %237, %246 : vector<8x32xf32>
    %248 = vector.broadcast %166 : vector<1x32xf32> to vector<8x32xf32>
    %249 = arith.mulf %247, %248 : vector<8x32xf32>
    %250 = vector.broadcast %167 : vector<1x32xf32> to vector<8x32xf32>
    %251 = arith.addf %249, %250 : vector<8x32xf32>
    %252 = arith.truncf %251 : vector<8x32xf32> to vector<8x32xbf16>
    %c1_88 = arith.constant 1 : index
    %c0_89 = arith.constant 0 : index
    %c0_90 = arith.constant 0 : index
    %253 = vector.load %arg6[%c1_88, %c0_89, %c0_90] : memref<2x32x64xbf16, #tpu.memory_space<vmem>>, vector<1x32x64xbf16>
    %254 = vector.shape_cast %253 : vector<1x32x64xbf16> to vector<32x64xbf16>
    %cst_91 = arith.constant dense<0.000000e+00> : vector<8x64xf32>
    %255 = tpu.matmul %252, %254, %cst_91 {dimension_numbers = #tpu.dot_dimension_numbers<[1], [0], [0], [1], [0, 0, 1, 1], [], []>} : vector<8x32xbf16>, vector<32x64xbf16>, vector<8x64xf32> -> vector<8x64xf32>
    %256 = vector.broadcast %168 : vector<1x64xf32> to vector<8x64xf32>
    %257 = arith.addf %255, %256 : vector<8x64xf32>
    %cst_92 = arith.constant 5.000000e-01 : f32
    %258 = vector.broadcast %cst_92 : f32 to vector<8x64xf32>
    %259 = arith.mulf %258, %257 : vector<8x64xf32>
    %cst_93 = arith.constant 4.471500e-02 : f32
    %260 = vector.broadcast %cst_93 : f32 to vector<8x64xf32>
    %261 = arith.mulf %260, %257 : vector<8x64xf32>
    %262 = arith.mulf %261, %257 : vector<8x64xf32>
    %263 = arith.mulf %262, %257 : vector<8x64xf32>
    %264 = arith.addf %257, %263 : vector<8x64xf32>
    %cst_94 = arith.constant 0.797884583 : f32
    %265 = vector.broadcast %cst_94 : f32 to vector<8x64xf32>
    %266 = arith.mulf %265, %264 : vector<8x64xf32>
    %267 = math.tanh %266 : vector<8x64xf32>
    %cst_95 = arith.constant 1.000000e+00 : f32
    %268 = vector.broadcast %cst_95 : f32 to vector<8x64xf32>
    %269 = arith.addf %268, %267 : vector<8x64xf32>
    %270 = arith.mulf %259, %269 : vector<8x64xf32>
    %271 = arith.truncf %270 : vector<8x64xf32> to vector<8x64xbf16>
    %c1_96 = arith.constant 1 : index
    %c0_97 = arith.constant 0 : index
    %c0_98 = arith.constant 0 : index
    %272 = vector.load %arg7[%c1_96, %c0_97, %c0_98] : memref<2x64x32xbf16, #tpu.memory_space<vmem>>, vector<1x64x32xbf16>
    %273 = vector.shape_cast %272 : vector<1x64x32xbf16> to vector<64x32xbf16>
    %cst_99 = arith.constant dense<0.000000e+00> : vector<8x32xf32>
    %274 = tpu.matmul %271, %273, %cst_99 {dimension_numbers = #tpu.dot_dimension_numbers<[1], [0], [0], [1], [0, 0, 1, 1], [], []>} : vector<8x64xbf16>, vector<64x32xbf16>, vector<8x32xf32> -> vector<8x32xf32>
    %275 = vector.broadcast %169 : vector<1x32xf32> to vector<8x32xf32>
    %276 = arith.addf %274, %275 : vector<8x32xf32>
    %277 = arith.addf %276, %251 : vector<8x32xf32>
    %cst_100 = arith.constant dense<0.000000e+00> : vector<8xf32>
    %278 = vector.multi_reduction <add>, %277, %cst_100 [1] : vector<8x32xf32> to vector<8xf32>
    %279 = vector.shape_cast %278 : vector<8xf32> to vector<8x1xf32>
    %cst_101 = arith.constant 3.200000e+01 : f32
    %280 = vector.broadcast %cst_101 : f32 to vector<8x1xf32>
    %281 = arith.divf %279, %280 : vector<8x1xf32>
    %282 = vector.broadcast %281 : vector<8x1xf32> to vector<8x32xf32>
    %283 = arith.subf %277, %282 : vector<8x32xf32>
    %284 = arith.mulf %283, %283 : vector<8x32xf32>
    %cst_102 = arith.constant dense<0.000000e+00> : vector<8xf32>
    %285 = vector.multi_reduction <add>, %284, %cst_102 [1] : vector<8x32xf32> to vector<8xf32>
    %286 = vector.shape_cast %285 : vector<8xf32> to vector<8x1xf32>
    %cst_103 = arith.constant 3.200000e+01 : f32
    %287 = vector.broadcast %cst_103 : f32 to vector<8x1xf32>
    %288 = arith.divf %286, %287 : vector<8x1xf32>
    %cst_104 = arith.constant 9.99999996E-13 : f32
    %289 = vector.broadcast %cst_104 : f32 to vector<8x1xf32>
    %290 = arith.addf %288, %289 : vector<8x1xf32>
    %291 = math.rsqrt %290 : vector<8x1xf32>
    %292 = vector.broadcast %291 : vector<8x1xf32> to vector<8x32xf32>
    %293 = arith.mulf %283, %292 : vector<8x32xf32>
    %294 = vector.broadcast %170 : vector<1x32xf32> to vector<8x32xf32>
    %295 = arith.mulf %293, %294 : vector<8x32xf32>
    %296 = vector.broadcast %171 : vector<1x32xf32> to vector<8x32xf32>
    %297 = arith.addf %295, %296 : vector<8x32xf32>
    %298 = arith.truncf %297 : vector<8x32xf32> to vector<8x32xbf16>
    %c0_105 = arith.constant 0 : index
    %c0_106 = arith.constant 0 : index
    %299 = vector.load %arg8[%c0_105, %c0_106] : memref<32x128xbf16, #tpu.memory_space<vmem>>, vector<32x128xbf16>
    %cst_107 = arith.constant dense<0.000000e+00> : vector<8x128xf32>
    %300 = tpu.matmul %298, %299, %cst_107 {dimension_numbers = #tpu.dot_dimension_numbers<[1], [0], [0], [1], [0, 0, 1, 1], [], []>} : vector<8x32xbf16>, vector<32x128xbf16>, vector<8x128xf32> -> vector<8x128xf32>
    %301 = vector.broadcast %3 : vector<1x128xf32> to vector<8x128xf32>
    %302 = arith.addf %300, %301 : vector<8x128xf32>
    %c0_108 = arith.constant 0 : index
    %c0_109 = arith.constant 0 : index
    %303 = vector.load %arg9[%c0_108, %c0_109] : memref<32x128xbf16, #tpu.memory_space<vmem>>, vector<32x128xbf16>
    %cst_110 = arith.constant 0.000000e+00 : f32
    %304 = vector.broadcast %cst_110 : f32 to vector<1x32xf32>
    %cst_111 = arith.constant 0.000000e+00 : f32
    %305 = vector.broadcast %cst_111 : f32 to vector<1x32xf32>
    %306 = vector.extract_strided_slice %302 {offsets = [0, 0], sizes = [1, 128], strides = [1, 1]} : vector<8x128xf32> to vector<1x128xf32>
    %307 = arith.truncf %304 : vector<1x32xf32> to vector<1x32xbf16>
    %cst_112 = arith.constant dense<0.000000e+00> : vector<1x128xf32>
    %308 = tpu.matmul %307, %303, %cst_112 {dimension_numbers = #tpu.dot_dimension_numbers<[1], [0], [0], [1], [0, 0, 1, 1], [], []>} : vector<1x32xbf16>, vector<32x128xbf16>, vector<1x128xf32> -> vector<1x128xf32>
    %309 = arith.addf %306, %308 : vector<1x128xf32>
    %310 = vector.extract_strided_slice %309 {offsets = [0, 0], sizes = [1, 32], strides = [1, 1]} : vector<1x128xf32> to vector<1x32xf32>
    %311 = arith.negf %310 : vector<1x32xf32>
    %312 = math.exp %311 : vector<1x32xf32>
    %cst_113 = arith.constant 1.000000e+00 : f32
    %313 = vector.broadcast %cst_113 : f32 to vector<1x32xf32>
    %314 = arith.addf %313, %312 : vector<1x32xf32>
    %315 = arith.divf %313, %314 : vector<1x32xf32>
    %316 = vector.extract_strided_slice %309 {offsets = [0, 32], sizes = [1, 32], strides = [1, 1]} : vector<1x128xf32> to vector<1x32xf32>
    %317 = arith.negf %316 : vector<1x32xf32>
    %318 = math.exp %317 : vector<1x32xf32>
    %cst_114 = arith.constant 1.000000e+00 : f32
    %319 = vector.broadcast %cst_114 : f32 to vector<1x32xf32>
    %320 = arith.addf %319, %318 : vector<1x32xf32>
    %321 = arith.divf %319, %320 : vector<1x32xf32>
    %322 = vector.extract_strided_slice %309 {offsets = [0, 64], sizes = [1, 32], strides = [1, 1]} : vector<1x128xf32> to vector<1x32xf32>
    %323 = math.tanh %322 : vector<1x32xf32>
    %324 = vector.extract_strided_slice %309 {offsets = [0, 96], sizes = [1, 32], strides = [1, 1]} : vector<1x128xf32> to vector<1x32xf32>
    %325 = arith.negf %324 : vector<1x32xf32>
    %326 = math.exp %325 : vector<1x32xf32>
    %cst_115 = arith.constant 1.000000e+00 : f32
    %327 = vector.broadcast %cst_115 : f32 to vector<1x32xf32>
    %328 = arith.addf %327, %326 : vector<1x32xf32>
    %329 = arith.divf %327, %328 : vector<1x32xf32>
    %330 = arith.mulf %321, %305 : vector<1x32xf32>
    %331 = arith.mulf %315, %323 : vector<1x32xf32>
    %332 = arith.addf %330, %331 : vector<1x32xf32>
    %333 = math.tanh %332 : vector<1x32xf32>
    %334 = arith.mulf %329, %333 : vector<1x32xf32>
    %c0_116 = arith.constant 0 : index
    %c0_117 = arith.constant 0 : index
    %c0_118 = arith.constant 0 : index
    %335 = vector.load %arg10[%c0_116, %c0_117, %c0_118] : memref<1x8x32xf32, #tpu.memory_space<vmem>>, vector<1x1x32xf32>
    %336 = vector.shape_cast %335 : vector<1x1x32xf32> to vector<1x32xf32>
    %337 = vector.shape_cast %334 : vector<1x32xf32> to vector<1x1x32xf32>
    tpu.vector_store %arg10[%c0_116, %c0_117, %c0_118], %337 {strides = array<i32>} : memref<1x8x32xf32, #tpu.memory_space<vmem>>, vector<1x1x32xf32>,
    %338 = vector.extract_strided_slice %302 {offsets = [1, 0], sizes = [1, 128], strides = [1, 1]} : vector<8x128xf32> to vector<1x128xf32>
    %339 = arith.truncf %334 : vector<1x32xf32> to vector<1x32xbf16>
    %cst_119 = arith.constant dense<0.000000e+00> : vector<1x128xf32>
    %340 = tpu.matmul %339, %303, %cst_119 {dimension_numbers = #tpu.dot_dimension_numbers<[1], [0], [0], [1], [0, 0, 1, 1], [], []>} : vector<1x32xbf16>, vector<32x128xbf16>, vector<1x128xf32> -> vector<1x128xf32>
    %341 = arith.addf %338, %340 : vector<1x128xf32>
    %342 = vector.extract_strided_slice %341 {offsets = [0, 0], sizes = [1, 32], strides = [1, 1]} : vector<1x128xf32> to vector<1x32xf32>
    %343 = arith.negf %342 : vector<1x32xf32>
    %344 = math.exp %343 : vector<1x32xf32>
    %cst_120 = arith.constant 1.000000e+00 : f32
    %345 = vector.broadcast %cst_120 : f32 to vector<1x32xf32>
    %346 = arith.addf %345, %344 : vector<1x32xf32>
    %347 = arith.divf %345, %346 : vector<1x32xf32>
    %348 = vector.extract_strided_slice %341 {offsets = [0, 32], sizes = [1, 32], strides = [1, 1]} : vector<1x128xf32> to vector<1x32xf32>
    %349 = arith.negf %348 : vector<1x32xf32>
    %350 = math.exp %349 : vector<1x32xf32>
    %cst_121 = arith.constant 1.000000e+00 : f32
    %351 = vector.broadcast %cst_121 : f32 to vector<1x32xf32>
    %352 = arith.addf %351, %350 : vector<1x32xf32>
    %353 = arith.divf %351, %352 : vector<1x32xf32>
    %354 = vector.extract_strided_slice %341 {offsets = [0, 64], sizes = [1, 32], strides = [1, 1]} : vector<1x128xf32> to vector<1x32xf32>
    %355 = math.tanh %354 : vector<1x32xf32>
    %356 = vector.extract_strided_slice %341 {offsets = [0, 96], sizes = [1, 32], strides = [1, 1]} : vector<1x128xf32> to vector<1x32xf32>
    %357 = arith.negf %356 : vector<1x32xf32>
    %358 = math.exp %357 : vector<1x32xf32>
    %cst_122 = arith.constant 1.000000e+00 : f32
    %359 = vector.broadcast %cst_122 : f32 to vector<1x32xf32>
    %360 = arith.addf %359, %358 : vector<1x32xf32>
    %361 = arith.divf %359, %360 : vector<1x32xf32>
    %362 = arith.mulf %353, %332 : vector<1x32xf32>
    %363 = arith.mulf %347, %355 : vector<1x32xf32>
    %364 = arith.addf %362, %363 : vector<1x32xf32>
    %365 = math.tanh %364 : vector<1x32xf32>
    %366 = arith.mulf %361, %365 : vector<1x32xf32>
    %c0_123 = arith.constant 0 : index
    %c1_124 = arith.constant 1 : index
    %c0_125 = arith.constant 0 : index
    %367 = vector.load %arg10[%c0_123, %c1_124, %c0_125] : memref<1x8x32xf32, #tpu.memory_space<vmem>>, vector<1x1x32xf32>
    %368 = vector.shape_cast %367 : vector<1x1x32xf32> to vector<1x32xf32>
    %369 = vector.shape_cast %366 : vector<1x32xf32> to vector<1x1x32xf32>
    tpu.vector_store %arg10[%c0_123, %c1_124, %c0_125], %369 {strides = array<i32>} : memref<1x8x32xf32, #tpu.memory_space<vmem>>, vector<1x1x32xf32>,
    %370 = vector.extract_strided_slice %302 {offsets = [2, 0], sizes = [1, 128], strides = [1, 1]} : vector<8x128xf32> to vector<1x128xf32>
    %371 = arith.truncf %366 : vector<1x32xf32> to vector<1x32xbf16>
    %cst_126 = arith.constant dense<0.000000e+00> : vector<1x128xf32>
    %372 = tpu.matmul %371, %303, %cst_126 {dimension_numbers = #tpu.dot_dimension_numbers<[1], [0], [0], [1], [0, 0, 1, 1], [], []>} : vector<1x32xbf16>, vector<32x128xbf16>, vector<1x128xf32> -> vector<1x128xf32>
    %373 = arith.addf %370, %372 : vector<1x128xf32>
    %374 = vector.extract_strided_slice %373 {offsets = [0, 0], sizes = [1, 32], strides = [1, 1]} : vector<1x128xf32> to vector<1x32xf32>
    %375 = arith.negf %374 : vector<1x32xf32>
    %376 = math.exp %375 : vector<1x32xf32>
    %cst_127 = arith.constant 1.000000e+00 : f32
    %377 = vector.broadcast %cst_127 : f32 to vector<1x32xf32>
    %378 = arith.addf %377, %376 : vector<1x32xf32>
    %379 = arith.divf %377, %378 : vector<1x32xf32>
    %380 = vector.extract_strided_slice %373 {offsets = [0, 32], sizes = [1, 32], strides = [1, 1]} : vector<1x128xf32> to vector<1x32xf32>
    %381 = arith.negf %380 : vector<1x32xf32>
    %382 = math.exp %381 : vector<1x32xf32>
    %cst_128 = arith.constant 1.000000e+00 : f32
    %383 = vector.broadcast %cst_128 : f32 to vector<1x32xf32>
    %384 = arith.addf %383, %382 : vector<1x32xf32>
    %385 = arith.divf %383, %384 : vector<1x32xf32>
    %386 = vector.extract_strided_slice %373 {offsets = [0, 64], sizes = [1, 32], strides = [1, 1]} : vector<1x128xf32> to vector<1x32xf32>
    %387 = math.tanh %386 : vector<1x32xf32>
    %388 = vector.extract_strided_slice %373 {offsets = [0, 96], sizes = [1, 32], strides = [1, 1]} : vector<1x128xf32> to vector<1x32xf32>
    %389 = arith.negf %388 : vector<1x32xf32>
    %390 = math.exp %389 : vector<1x32xf32>
    %cst_129 = arith.constant 1.000000e+00 : f32
    %391 = vector.broadcast %cst_129 : f32 to vector<1x32xf32>
    %392 = arith.addf %391, %390 : vector<1x32xf32>
    %393 = arith.divf %391, %392 : vector<1x32xf32>
    %394 = arith.mulf %385, %364 : vector<1x32xf32>
    %395 = arith.mulf %379, %387 : vector<1x32xf32>
    %396 = arith.addf %394, %395 : vector<1x32xf32>
    %397 = math.tanh %396 : vector<1x32xf32>
    %398 = arith.mulf %393, %397 : vector<1x32xf32>
    %c0_130 = arith.constant 0 : index
    %c2 = arith.constant 2 : index
    %c0_131 = arith.constant 0 : index
    %399 = vector.load %arg10[%c0_130, %c2, %c0_131] : memref<1x8x32xf32, #tpu.memory_space<vmem>>, vector<1x1x32xf32>
    %400 = vector.shape_cast %399 : vector<1x1x32xf32> to vector<1x32xf32>
    %401 = vector.shape_cast %398 : vector<1x32xf32> to vector<1x1x32xf32>
    tpu.vector_store %arg10[%c0_130, %c2, %c0_131], %401 {strides = array<i32>} : memref<1x8x32xf32, #tpu.memory_space<vmem>>, vector<1x1x32xf32>,
    %402 = vector.extract_strided_slice %302 {offsets = [3, 0], sizes = [1, 128], strides = [1, 1]} : vector<8x128xf32> to vector<1x128xf32>
    %403 = arith.truncf %398 : vector<1x32xf32> to vector<1x32xbf16>
    %cst_132 = arith.constant dense<0.000000e+00> : vector<1x128xf32>
    %404 = tpu.matmul %403, %303, %cst_132 {dimension_numbers = #tpu.dot_dimension_numbers<[1], [0], [0], [1], [0, 0, 1, 1], [], []>} : vector<1x32xbf16>, vector<32x128xbf16>, vector<1x128xf32> -> vector<1x128xf32>
    %405 = arith.addf %402, %404 : vector<1x128xf32>
    %406 = vector.extract_strided_slice %405 {offsets = [0, 0], sizes = [1, 32], strides = [1, 1]} : vector<1x128xf32> to vector<1x32xf32>
    %407 = arith.negf %406 : vector<1x32xf32>
    %408 = math.exp %407 : vector<1x32xf32>
    %cst_133 = arith.constant 1.000000e+00 : f32
    %409 = vector.broadcast %cst_133 : f32 to vector<1x32xf32>
    %410 = arith.addf %409, %408 : vector<1x32xf32>
    %411 = arith.divf %409, %410 : vector<1x32xf32>
    %412 = vector.extract_strided_slice %405 {offsets = [0, 32], sizes = [1, 32], strides = [1, 1]} : vector<1x128xf32> to vector<1x32xf32>
    %413 = arith.negf %412 : vector<1x32xf32>
    %414 = math.exp %413 : vector<1x32xf32>
    %cst_134 = arith.constant 1.000000e+00 : f32
    %415 = vector.broadcast %cst_134 : f32 to vector<1x32xf32>
    %416 = arith.addf %415, %414 : vector<1x32xf32>
    %417 = arith.divf %415, %416 : vector<1x32xf32>
    %418 = vector.extract_strided_slice %405 {offsets = [0, 64], sizes = [1, 32], strides = [1, 1]} : vector<1x128xf32> to vector<1x32xf32>
    %419 = math.tanh %418 : vector<1x32xf32>
    %420 = vector.extract_strided_slice %405 {offsets = [0, 96], sizes = [1, 32], strides = [1, 1]} : vector<1x128xf32> to vector<1x32xf32>
    %421 = arith.negf %420 : vector<1x32xf32>
    %422 = math.exp %421 : vector<1x32xf32>
    %cst_135 = arith.constant 1.000000e+00 : f32
    %423 = vector.broadcast %cst_135 : f32 to vector<1x32xf32>
    %424 = arith.addf %423, %422 : vector<1x32xf32>
    %425 = arith.divf %423, %424 : vector<1x32xf32>
    %426 = arith.mulf %417, %396 : vector<1x32xf32>
    %427 = arith.mulf %411, %419 : vector<1x32xf32>
    %428 = arith.addf %426, %427 : vector<1x32xf32>
    %429 = math.tanh %428 : vector<1x32xf32>
    %430 = arith.mulf %425, %429 : vector<1x32xf32>
    %c0_136 = arith.constant 0 : index
    %c3 = arith.constant 3 : index
    %c0_137 = arith.constant 0 : index
    %431 = vector.load %arg10[%c0_136, %c3, %c0_137] : memref<1x8x32xf32, #tpu.memory_space<vmem>>, vector<1x1x32xf32>
    %432 = vector.shape_cast %431 : vector<1x1x32xf32> to vector<1x32xf32>
    %433 = vector.shape_cast %430 : vector<1x32xf32> to vector<1x1x32xf32>
    tpu.vector_store %arg10[%c0_136, %c3, %c0_137], %433 {strides = array<i32>} : memref<1x8x32xf32, #tpu.memory_space<vmem>>, vector<1x1x32xf32>,
    %434 = vector.extract_strided_slice %302 {offsets = [4, 0], sizes = [1, 128], strides = [1, 1]} : vector<8x128xf32> to vector<1x128xf32>
    %435 = arith.truncf %430 : vector<1x32xf32> to vector<1x32xbf16>
    %cst_138 = arith.constant dense<0.000000e+00> : vector<1x128xf32>
    %436 = tpu.matmul %435, %303, %cst_138 {dimension_numbers = #tpu.dot_dimension_numbers<[1], [0], [0], [1], [0, 0, 1, 1], [], []>} : vector<1x32xbf16>, vector<32x128xbf16>, vector<1x128xf32> -> vector<1x128xf32>
    %437 = arith.addf %434, %436 : vector<1x128xf32>
    %438 = vector.extract_strided_slice %437 {offsets = [0, 0], sizes = [1, 32], strides = [1, 1]} : vector<1x128xf32> to vector<1x32xf32>
    %439 = arith.negf %438 : vector<1x32xf32>
    %440 = math.exp %439 : vector<1x32xf32>
    %cst_139 = arith.constant 1.000000e+00 : f32
    %441 = vector.broadcast %cst_139 : f32 to vector<1x32xf32>
    %442 = arith.addf %441, %440 : vector<1x32xf32>
    %443 = arith.divf %441, %442 : vector<1x32xf32>
    %444 = vector.extract_strided_slice %437 {offsets = [0, 32], sizes = [1, 32], strides = [1, 1]} : vector<1x128xf32> to vector<1x32xf32>
    %445 = arith.negf %444 : vector<1x32xf32>
    %446 = math.exp %445 : vector<1x32xf32>
    %cst_140 = arith.constant 1.000000e+00 : f32
    %447 = vector.broadcast %cst_140 : f32 to vector<1x32xf32>
    %448 = arith.addf %447, %446 : vector<1x32xf32>
    %449 = arith.divf %447, %448 : vector<1x32xf32>
    %450 = vector.extract_strided_slice %437 {offsets = [0, 64], sizes = [1, 32], strides = [1, 1]} : vector<1x128xf32> to vector<1x32xf32>
    %451 = math.tanh %450 : vector<1x32xf32>
    %452 = vector.extract_strided_slice %437 {offsets = [0, 96], sizes = [1, 32], strides = [1, 1]} : vector<1x128xf32> to vector<1x32xf32>
    %453 = arith.negf %452 : vector<1x32xf32>
    %454 = math.exp %453 : vector<1x32xf32>
    %cst_141 = arith.constant 1.000000e+00 : f32
    %455 = vector.broadcast %cst_141 : f32 to vector<1x32xf32>
    %456 = arith.addf %455, %454 : vector<1x32xf32>
    %457 = arith.divf %455, %456 : vector<1x32xf32>
    %458 = arith.mulf %449, %428 : vector<1x32xf32>
    %459 = arith.mulf %443, %451 : vector<1x32xf32>
    %460 = arith.addf %458, %459 : vector<1x32xf32>
    %461 = math.tanh %460 : vector<1x32xf32>
    %462 = arith.mulf %457, %461 : vector<1x32xf32>
    %c0_142 = arith.constant 0 : index
    %c4 = arith.constant 4 : index
    %c0_143 = arith.constant 0 : index
    %463 = vector.load %arg10[%c0_142, %c4, %c0_143] : memref<1x8x32xf32, #tpu.memory_space<vmem>>, vector<1x1x32xf32>
    %464 = vector.shape_cast %463 : vector<1x1x32xf32> to vector<1x32xf32>
    %465 = vector.shape_cast %462 : vector<1x32xf32> to vector<1x1x32xf32>
    tpu.vector_store %arg10[%c0_142, %c4, %c0_143], %465 {strides = array<i32>} : memref<1x8x32xf32, #tpu.memory_space<vmem>>, vector<1x1x32xf32>,
    %466 = vector.extract_strided_slice %302 {offsets = [5, 0], sizes = [1, 128], strides = [1, 1]} : vector<8x128xf32> to vector<1x128xf32>
    %467 = arith.truncf %462 : vector<1x32xf32> to vector<1x32xbf16>
    %cst_144 = arith.constant dense<0.000000e+00> : vector<1x128xf32>
    %468 = tpu.matmul %467, %303, %cst_144 {dimension_numbers = #tpu.dot_dimension_numbers<[1], [0], [0], [1], [0, 0, 1, 1], [], []>} : vector<1x32xbf16>, vector<32x128xbf16>, vector<1x128xf32> -> vector<1x128xf32>
    %469 = arith.addf %466, %468 : vector<1x128xf32>
    %470 = vector.extract_strided_slice %469 {offsets = [0, 0], sizes = [1, 32], strides = [1, 1]} : vector<1x128xf32> to vector<1x32xf32>
    %471 = arith.negf %470 : vector<1x32xf32>
    %472 = math.exp %471 : vector<1x32xf32>
    %cst_145 = arith.constant 1.000000e+00 : f32
    %473 = vector.broadcast %cst_145 : f32 to vector<1x32xf32>
    %474 = arith.addf %473, %472 : vector<1x32xf32>
    %475 = arith.divf %473, %474 : vector<1x32xf32>
    %476 = vector.extract_strided_slice %469 {offsets = [0, 32], sizes = [1, 32], strides = [1, 1]} : vector<1x128xf32> to vector<1x32xf32>
    %477 = arith.negf %476 : vector<1x32xf32>
    %478 = math.exp %477 : vector<1x32xf32>
    %cst_146 = arith.constant 1.000000e+00 : f32
    %479 = vector.broadcast %cst_146 : f32 to vector<1x32xf32>
    %480 = arith.addf %479, %478 : vector<1x32xf32>
    %481 = arith.divf %479, %480 : vector<1x32xf32>
    %482 = vector.extract_strided_slice %469 {offsets = [0, 64], sizes = [1, 32], strides = [1, 1]} : vector<1x128xf32> to vector<1x32xf32>
    %483 = math.tanh %482 : vector<1x32xf32>
    %484 = vector.extract_strided_slice %469 {offsets = [0, 96], sizes = [1, 32], strides = [1, 1]} : vector<1x128xf32> to vector<1x32xf32>
    %485 = arith.negf %484 : vector<1x32xf32>
    %486 = math.exp %485 : vector<1x32xf32>
    %cst_147 = arith.constant 1.000000e+00 : f32
    %487 = vector.broadcast %cst_147 : f32 to vector<1x32xf32>
    %488 = arith.addf %487, %486 : vector<1x32xf32>
    %489 = arith.divf %487, %488 : vector<1x32xf32>
    %490 = arith.mulf %481, %460 : vector<1x32xf32>
    %491 = arith.mulf %475, %483 : vector<1x32xf32>
    %492 = arith.addf %490, %491 : vector<1x32xf32>
    %493 = math.tanh %492 : vector<1x32xf32>
    %494 = arith.mulf %489, %493 : vector<1x32xf32>
    %c0_148 = arith.constant 0 : index
    %c5 = arith.constant 5 : index
    %c0_149 = arith.constant 0 : index
    %495 = vector.load %arg10[%c0_148, %c5, %c0_149] : memref<1x8x32xf32, #tpu.memory_space<vmem>>, vector<1x1x32xf32>
    %496 = vector.shape_cast %495 : vector<1x1x32xf32> to vector<1x32xf32>
    %497 = vector.shape_cast %494 : vector<1x32xf32> to vector<1x1x32xf32>
    tpu.vector_store %arg10[%c0_148, %c5, %c0_149], %497 {strides = array<i32>} : memref<1x8x32xf32, #tpu.memory_space<vmem>>, vector<1x1x32xf32>,
    %498 = vector.extract_strided_slice %302 {offsets = [6, 0], sizes = [1, 128], strides = [1, 1]} : vector<8x128xf32> to vector<1x128xf32>
    %499 = arith.truncf %494 : vector<1x32xf32> to vector<1x32xbf16>
    %cst_150 = arith.constant dense<0.000000e+00> : vector<1x128xf32>
    %500 = tpu.matmul %499, %303, %cst_150 {dimension_numbers = #tpu.dot_dimension_numbers<[1], [0], [0], [1], [0, 0, 1, 1], [], []>} : vector<1x32xbf16>, vector<32x128xbf16>, vector<1x128xf32> -> vector<1x128xf32>
    %501 = arith.addf %498, %500 : vector<1x128xf32>
    %502 = vector.extract_strided_slice %501 {offsets = [0, 0], sizes = [1, 32], strides = [1, 1]} : vector<1x128xf32> to vector<1x32xf32>
    %503 = arith.negf %502 : vector<1x32xf32>
    %504 = math.exp %503 : vector<1x32xf32>
    %cst_151 = arith.constant 1.000000e+00 : f32
    %505 = vector.broadcast %cst_151 : f32 to vector<1x32xf32>
    %506 = arith.addf %505, %504 : vector<1x32xf32>
    %507 = arith.divf %505, %506 : vector<1x32xf32>
    %508 = vector.extract_strided_slice %501 {offsets = [0, 32], sizes = [1, 32], strides = [1, 1]} : vector<1x128xf32> to vector<1x32xf32>
    %509 = arith.negf %508 : vector<1x32xf32>
    %510 = math.exp %509 : vector<1x32xf32>
    %cst_152 = arith.constant 1.000000e+00 : f32
    %511 = vector.broadcast %cst_152 : f32 to vector<1x32xf32>
    %512 = arith.addf %511, %510 : vector<1x32xf32>
    %513 = arith.divf %511, %512 : vector<1x32xf32>
    %514 = vector.extract_strided_slice %501 {offsets = [0, 64], sizes = [1, 32], strides = [1, 1]} : vector<1x128xf32> to vector<1x32xf32>
    %515 = math.tanh %514 : vector<1x32xf32>
    %516 = vector.extract_strided_slice %501 {offsets = [0, 96], sizes = [1, 32], strides = [1, 1]} : vector<1x128xf32> to vector<1x32xf32>
    %517 = arith.negf %516 : vector<1x32xf32>
    %518 = math.exp %517 : vector<1x32xf32>
    %cst_153 = arith.constant 1.000000e+00 : f32
    %519 = vector.broadcast %cst_153 : f32 to vector<1x32xf32>
    %520 = arith.addf %519, %518 : vector<1x32xf32>
    %521 = arith.divf %519, %520 : vector<1x32xf32>
    %522 = arith.mulf %513, %492 : vector<1x32xf32>
    %523 = arith.mulf %507, %515 : vector<1x32xf32>
    %524 = arith.addf %522, %523 : vector<1x32xf32>
    %525 = math.tanh %524 : vector<1x32xf32>
    %526 = arith.mulf %521, %525 : vector<1x32xf32>
    %c0_154 = arith.constant 0 : index
    %c6 = arith.constant 6 : index
    %c0_155 = arith.constant 0 : index
    %527 = vector.load %arg10[%c0_154, %c6, %c0_155] : memref<1x8x32xf32, #tpu.memory_space<vmem>>, vector<1x1x32xf32>
    %528 = vector.shape_cast %527 : vector<1x1x32xf32> to vector<1x32xf32>
    %529 = vector.shape_cast %526 : vector<1x32xf32> to vector<1x1x32xf32>
    tpu.vector_store %arg10[%c0_154, %c6, %c0_155], %529 {strides = array<i32>} : memref<1x8x32xf32, #tpu.memory_space<vmem>>, vector<1x1x32xf32>,
    %530 = vector.extract_strided_slice %302 {offsets = [7, 0], sizes = [1, 128], strides = [1, 1]} : vector<8x128xf32> to vector<1x128xf32>
    %531 = arith.truncf %526 : vector<1x32xf32> to vector<1x32xbf16>
    %cst_156 = arith.constant dense<0.000000e+00> : vector<1x128xf32>
    %532 = tpu.matmul %531, %303, %cst_156 {dimension_numbers = #tpu.dot_dimension_numbers<[1], [0], [0], [1], [0, 0, 1, 1], [], []>} : vector<1x32xbf16>, vector<32x128xbf16>, vector<1x128xf32> -> vector<1x128xf32>
    %533 = arith.addf %530, %532 : vector<1x128xf32>
    %534 = vector.extract_strided_slice %533 {offsets = [0, 0], sizes = [1, 32], strides = [1, 1]} : vector<1x128xf32> to vector<1x32xf32>
    %535 = arith.negf %534 : vector<1x32xf32>
    %536 = math.exp %535 : vector<1x32xf32>
    %cst_157 = arith.constant 1.000000e+00 : f32
    %537 = vector.broadcast %cst_157 : f32 to vector<1x32xf32>
    %538 = arith.addf %537, %536 : vector<1x32xf32>
    %539 = arith.divf %537, %538 : vector<1x32xf32>
    %540 = vector.extract_strided_slice %533 {offsets = [0, 32], sizes = [1, 32], strides = [1, 1]} : vector<1x128xf32> to vector<1x32xf32>
    %541 = arith.negf %540 : vector<1x32xf32>
    %542 = math.exp %541 : vector<1x32xf32>
    %cst_158 = arith.constant 1.000000e+00 : f32
    %543 = vector.broadcast %cst_158 : f32 to vector<1x32xf32>
    %544 = arith.addf %543, %542 : vector<1x32xf32>
    %545 = arith.divf %543, %544 : vector<1x32xf32>
    %546 = vector.extract_strided_slice %533 {offsets = [0, 64], sizes = [1, 32], strides = [1, 1]} : vector<1x128xf32> to vector<1x32xf32>
    %547 = math.tanh %546 : vector<1x32xf32>
    %548 = vector.extract_strided_slice %533 {offsets = [0, 96], sizes = [1, 32], strides = [1, 1]} : vector<1x128xf32> to vector<1x32xf32>
    %549 = arith.negf %548 : vector<1x32xf32>
    %550 = math.exp %549 : vector<1x32xf32>
    %cst_159 = arith.constant 1.000000e+00 : f32
    %551 = vector.broadcast %cst_159 : f32 to vector<1x32xf32>
    %552 = arith.addf %551, %550 : vector<1x32xf32>
    %553 = arith.divf %551, %552 : vector<1x32xf32>
    %554 = arith.mulf %545, %524 : vector<1x32xf32>
    %555 = arith.mulf %539, %547 : vector<1x32xf32>
    %556 = arith.addf %554, %555 : vector<1x32xf32>
    %557 = math.tanh %556 : vector<1x32xf32>
    %558 = arith.mulf %553, %557 : vector<1x32xf32>
    %c0_160 = arith.constant 0 : index
    %c7 = arith.constant 7 : index
    %c0_161 = arith.constant 0 : index
    %559 = vector.load %arg10[%c0_160, %c7, %c0_161] : memref<1x8x32xf32, #tpu.memory_space<vmem>>, vector<1x1x32xf32>
    %560 = vector.shape_cast %559 : vector<1x1x32xf32> to vector<1x32xf32>
    %561 = vector.shape_cast %558 : vector<1x32xf32> to vector<1x1x32xf32>
    tpu.vector_store %arg10[%c0_160, %c7, %c0_161], %561 {strides = array<i32>} : memref<1x8x32xf32, #tpu.memory_space<vmem>>, vector<1x1x32xf32>,
    %c0_162 = arith.constant 0 : index
    %c0_163 = arith.constant 0 : index
    %c0_164 = arith.constant 0 : index
    %562 = vector.load %arg11[%c0_162, %c0_163, %c0_164] : memref<1x1x32xf32, #tpu.memory_space<vmem>>, vector<1x1x32xf32>
    %563 = vector.shape_cast %562 : vector<1x1x32xf32> to vector<1x32xf32>
    %564 = vector.shape_cast %558 : vector<1x32xf32> to vector<1x1x32xf32>
    tpu.vector_store %arg11[%c0_162, %c0_163, %c0_164], %564 {strides = array<i32>} : memref<1x1x32xf32, #tpu.memory_space<vmem>>, vector<1x1x32xf32>,
    %c0_165 = arith.constant 0 : index
    %c0_166 = arith.constant 0 : index
    %c0_167 = arith.constant 0 : index
    %565 = vector.load %arg12[%c0_165, %c0_166, %c0_167] : memref<1x1x32xf32, #tpu.memory_space<vmem>>, vector<1x1x32xf32>
    %566 = vector.shape_cast %565 : vector<1x1x32xf32> to vector<1x32xf32>
    %567 = vector.shape_cast %556 : vector<1x32xf32> to vector<1x1x32xf32>
    tpu.vector_store %arg12[%c0_165, %c0_166, %c0_167], %567 {strides = array<i32>} : memref<1x1x32xf32, #tpu.memory_space<vmem>>, vector<1x1x32xf32>,
    return
  }
  func.func @transform_0(%arg0: i32) -> (i32, i32, i32) {
    %c0_i32 = arith.constant 0 : i32
    %c0_i32_0 = arith.constant 0 : i32
    %c0_i32_1 = arith.constant 0 : i32
    return %arg0, %c0_i32, %c0_i32_0 : i32, i32, i32
  }
  func.func @transform_1(%arg0: i32) -> (i32, i32) {
    %c0_i32 = arith.constant 0 : i32
    %c0_i32_0 = arith.constant 0 : i32
    %c0_i32_1 = arith.constant 0 : i32
    return %c0_i32, %c0_i32_0 : i32, i32
  }
  func.func @transform_2(%arg0: i32) -> (i32, i32, i32) {
    %c0_i32 = arith.constant 0 : i32
    %c0_i32_0 = arith.constant 0 : i32
    %c0_i32_1 = arith.constant 0 : i32
    %c0_i32_2 = arith.constant 0 : i32
    return %c0_i32, %c0_i32_0, %c0_i32_1 : i32, i32, i32
  }
  func.func @transform_3(%arg0: i32) -> (i32, i32, i32) {
    %c0_i32 = arith.constant 0 : i32
    %c0_i32_0 = arith.constant 0 : i32
    %c0_i32_1 = arith.constant 0 : i32
    %c0_i32_2 = arith.constant 0 : i32
    return %c0_i32, %c0_i32_0, %c0_i32_1 : i32, i32, i32
  }
  func.func @transform_4(%arg0: i32) -> (i32, i32, i32, i32) {
    %c0_i32 = arith.constant 0 : i32
    %c0_i32_0 = arith.constant 0 : i32
    %c0_i32_1 = arith.constant 0 : i32
    %c0_i32_2 = arith.constant 0 : i32
    %c0_i32_3 = arith.constant 0 : i32
    return %c0_i32, %c0_i32_0, %c0_i32_1, %c0_i32_2 : i32, i32, i32, i32
  }
  func.func @transform_5(%arg0: i32) -> (i32, i32, i32) {
    %c0_i32 = arith.constant 0 : i32
    %c0_i32_0 = arith.constant 0 : i32
    %c0_i32_1 = arith.constant 0 : i32
    %c0_i32_2 = arith.constant 0 : i32
    return %c0_i32, %c0_i32_0, %c0_i32_1 : i32, i32, i32
  }
  func.func @transform_6(%arg0: i32) -> (i32, i32, i32) {
    %c0_i32 = arith.constant 0 : i32
    %c0_i32_0 = arith.constant 0 : i32
    %c0_i32_1 = arith.constant 0 : i32
    %c0_i32_2 = arith.constant 0 : i32
    return %c0_i32, %c0_i32_0, %c0_i32_1 : i32, i32, i32
  }
  func.func @transform_7(%arg0: i32) -> (i32, i32) {
    %c0_i32 = arith.constant 0 : i32
    %c0_i32_0 = arith.constant 0 : i32
    %c0_i32_1 = arith.constant 0 : i32
    return %c0_i32, %c0_i32_0 : i32, i32
  }
  func.func @transform_8(%arg0: i32) -> (i32, i32) {
    %c0_i32 = arith.constant 0 : i32
    %c0_i32_0 = arith.constant 0 : i32
    %c0_i32_1 = arith.constant 0 : i32
    return %c0_i32, %c0_i32_0 : i32, i32
  }
  func.func @transform_9(%arg0: i32) -> (i32, i32, i32) {
    %c0_i32 = arith.constant 0 : i32
    %c0_i32_0 = arith.constant 0 : i32
    %c0_i32_1 = arith.constant 0 : i32
    return %arg0, %c0_i32, %c0_i32_0 : i32, i32, i32
  }
  func.func @transform_10(%arg0: i32) -> (i32, i32, i32) {
    %c0_i32 = arith.constant 0 : i32
    %c0_i32_0 = arith.constant 0 : i32
    %c0_i32_1 = arith.constant 0 : i32
    return %arg0, %c0_i32, %c0_i32_0 : i32, i32, i32
  }
  func.func @transform_11(%arg0: i32) -> (i32, i32, i32) {
    %c0_i32 = arith.constant 0 : i32
    %c0_i32_0 = arith.constant 0 : i32
    %c0_i32_1 = arith.constant 0 : i32
    return %arg0, %c0_i32, %c0_i32_0 : i32, i32, i32
  }
}

</mosaic_0001>

<bundles_post_ra>
// kernel: tpu_custom_call.1
= control target key start
LH: loop header
LB: loop body
LE: loop exit
PB: predicated region body
PF: predicated region fallthrough
CT: control target
= control target key end

     0   :  { %s4313_s0 = inlined_call_operand.hbm [shape: f32[2,8,32], index: 0, kind: input, shape index: {}]   ;;  %s4314_s1 = inlined_call_operand.hbm [shape: f32[3,128], index: 1, kind: input, shape index: {}]   ;;  %s4315_s2 = inlined_call_operand.hbm [shape: f32[2,8,96], index: 2, kind: input, shape index: {}]   ;;  %s4316_s3 = inlined_call_operand.vmem [shape: bf16[2,32,96], index: 3, kind: input, shape index: {}]   ;;  %s4317_s4 = inlined_call_operand.vmem [shape: bf16[2,2,16,32], index: 4, kind: input, shape index: {}]   ;;  %s4318_s5 = inlined_call_operand.vmem [shape: bf16[2,32,64], index: 5, kind: input, shape index: {}]   ;;  %s4319_s6 = inlined_call_operand.vmem [shape: bf16[2,64,32], index: 6, kind: input, shape index: {}]   ;;  %s4320_s7 = inlined_call_operand.vmem [shape: bf16[32,128], index: 7, kind: input, shape index: {}]   ;;  %s4321_s8 = inlined_call_operand.hbm [shape: bf16[32,128], index: 8, kind: input, shape index: {}]   ;;  %s4322_s9 = inlined_call_operand.hbm [shape: f32[2,8,32], index: 9, kind: output, shape index: {0}]   ;;  %s4323_s10 = inlined_call_operand.hbm [shape: f32[2,1,32], index: 10, kind: output, shape index: {1}]   ;;  %s4324_s11 = inlined_call_operand.hbm [shape: f32[2,1,32], index: 11, kind: output, shape index: {2}]  }
   0x1   :  { %4334 = sst [smem:[#allocation21_spill]] %s4313_s0 }
   0x2   :  { %4335 = sst [smem:[#allocation22_spill]] %s4314_s1 }
   0x3   :  { %4336 = sst [smem:[#allocation23_spill]] %s4315_s2 }
   0x4   :  { %4337 = sst [smem:[#allocation24_spill]] %s4316_s3 }
   0x5   :  { %4338 = sst [smem:[#allocation25_spill]] %s4317_s4 }
   0x6   :  { %4339 = sst [smem:[#allocation26_spill]] %s4324_s11 }
   0x7   :  { %17 = vsyncpa [#allocation3], 0 }
   0x8   :  { %19 = vsyncpa [#allocation3 + $0x1], 0 }
   0x9   :  { %20 = vsyncpa [#allocation6], 0 }
   0xa   :  { %21 = vsyncpa [#allocation9], 0 }
   0xb   :  { %22 = vsyncpa [#allocation4], 0 }
   0xc   :  { %24 = vsyncpa [#allocation4 + $0x1], 0 }
   0xd   :  { %25 = vsyncpa [#allocation12], 0 }
   0xe   :  { %27 = vsyncpa [#allocation12 + $0x1], 0  ;;  %s3573_s17 = smov 0   ;;  %s3575_s18 = smov 0  }
   0xf   :  { %s3577_s19 = smov 0   ;;  %s3579_s20 = smov 0  }
  0x10 LB: > { %4340 = sst [smem:[#allocation19_spill]] %s3479_s17  ;;  %s3594_s21 = sadd.s32 4294967295, %s3491_s20   ;;  %s3491_s20 = sphi %s3579_s20, %s4372_s20   ;;  %s3487_s19 = sphi %s3577_s19, %s4371_s19   ;;  %s3483_s18 = sphi %s3575_s18, %s4370_s18   ;;  %s3479_s17 = sphi %s3573_s17, %s4369_s17  }
  0x11   : > { %s4325_s22 = sadd.s32 4294967294, %s3491_s20   ;;  %p53_p0 = scmp.ne.s32.totalorder %s3483_s18, %s3479_s17 }
  0x12   : > { %p4327_p1 = scmp.eq.s32.totalorder %s3594_s21, 0  ;;  %p251_p3 = scmp.eq.s32.totalorder %s4325_s22, 1 }
  0x13   : > { %p2653_p5 = scmp.ge.s32.totalorder %s3491_s20, 1  ;;  %p310_p7 = scmp.lt.s32.totalorder %s3491_s20, 3 }
  0x14   : > { %p3605_p4 = por %p4327_p1, %p53_p0  ;;  %p3610_p6 = por %p251_p3, %p53_p0 }
  0x15   : > { %p3615_p8 = pnand %p2653_p5, %p310_p7  ;;  %s3493_s26 = smov [#allocation5]  }
  0x16   : > { %s4341_s23 = scalar_select %p3605_p4, 1, 0 }
  0x17   : > { %s4342_s24 = scalar_select %p3610_p6, 1, 0 }
  0x18   : > { %s4344_s25 = scalar_select %p3615_p8, 1, 0 }
  0x19   : > { %4343 = sst [smem:[#allocation20_spill]] %s4342_s24  ;;  %s323_s27 = sshll.u32 %s3493_s26, 4  ;;  %s324_s27 = int_to_ptr.vmem [resolvable:$true] %s323_s27 }
  0x1a   : > { %p3045_p10 = pneg %p3615_p8  ;;  %s3494_s28 = smov [#allocation7]  }
  0x1b   : > { %s333_s29 = sshll.u32 %s3494_s28, 4  ;;  %s3495_s12 = smov [#allocation8]   ;;  %s3628_s29 = int_to_ptr.vmem [resolvable:$true] %s333_s29 }
  0x1c   : > { %p3624_p11 = pnand %p3045_p10, %p4327_p1  ;;  %s3630_s13 = sshll.u32 %s3495_s12, 4  ;;  %s362_s13 = int_to_ptr.vmem [resolvable:$true] %s3630_s13 }
  0x1d   : > { %s4346_s1 = sld [smem:[#allocation22_spill]] }
  0x1e   : > { %p3640_p13 = pneg %p3624_p11 }
  0x23   : > { %s3243_s16 = scalar_lea.hbm %s4346_s1, 64 }
  0x24   : > { %p3244_p12 = scmp.ne.s32.totalorder %s4346_s1, %s3243_s16  ;;  %p3250_p5 = scmp.lt.u32.totalorder %s3243_s16, %s4346_s1 }
  0x26   : > { %p3246_p0 = pnand %p3640_p13, %p3244_p12 }
  0x28   : > { %p3247_p3 = pneg %p3246_p0 }
  0x2a   : > { %p3252_p7 = pnand %p3250_p5, %p3247_p3 }
  0x2c   : > { %3255 = shalt.err (!%p3252_p7)
}
  0x2d   : > { %s3256_s14 = scalar_lea.vmem %s324_s27, 64  ;;  %p3264_p2 = scmp.lt.s32.totalorder %s324_s27, %s324_s27 }
  0x2e   : > { %p3257_p10 = scmp.ne.s32.totalorder %s324_s27, %s3256_s14  ;;  %p3265_p6 = scmp.lt.s32.totalorder %s3256_s14, %s3256_s14 }
  0x30   : > { %p3259_p9 = pnand %p3257_p10, %p3640_p13  ;;  %p3266_p4 = por %p3265_p6, %p3264_p2 }
  0x32   : > { %p3260_p1 = pneg %p3259_p9 }
  0x34   : > { %p3267_p8 = pnand %p3266_p4, %p3260_p1 }
  0x36   : > { %3270 = shalt.err (!%p3267_p8)
}
  0x37   : > { %3048 = dma.hbm_to_vmem [thread:$0]  (!%p3624_p11), %s4346_s1, 64, %s324_s27, [#allocation6]  }
  0x38   : > { %s4348_s2 = sld [smem:[#allocation23_spill]] }
  0x3e   : > { %s3271_s26 = scalar_lea.hbm %s4348_s2, 256 }
  0x3f   : > { %p3272_p9 = scmp.ne.s32.totalorder %s4348_s2, %s3271_s26  ;;  %p3278_p1 = scmp.lt.u32.totalorder %s3271_s26, %s4348_s2 }
  0x41   : > { %p3274_p12 = pnand %p3272_p9, %p3640_p13 }
  0x43   : > { %p3275_p2 = pneg %p3274_p12 }
  0x45   : > { %p3280_p4 = pnand %p3278_p1, %p3275_p2 }
  0x47   : > { %3283 = shalt.err (!%p3280_p4)
}
  0x48   : > { %s3284_s27 = scalar_lea.vmem %s3628_s29, 256  ;;  %p3292_p3 = scmp.lt.s32.totalorder %s3628_s29, %s3628_s29 }
  0x49   : > { %p3285_p6 = scmp.ne.s32.totalorder %s3628_s29, %s3284_s27  ;;  %p3293_p5 = scmp.lt.s32.totalorder %s3284_s27, %s3284_s27 }
  0x4b   : > { %p3287_p8 = pnand %p3285_p6, %p3640_p13  ;;  %p3294_p7 = por %p3293_p5, %p3292_p3 }
  0x4d   : > { %p3288_p0 = pneg %p3287_p8 }
  0x4f   : > { %p3295_p10 = pnand %p3294_p7, %p3288_p0 }
  0x51   : > { %3298 = shalt.err (!%p3295_p10)
}
  0x52   : > { %s3496_s17 = smov 128   ;;  %s3497_s11 = smov 8  }
  0x53   : > { %3051 = dma.hbm_to_vmem [thread:$0]  (!%p3624_p11), %s4348_s2, 256, %s3628_s29, [#allocation6], %s3496_s17, %s3496_s17, %s3497_s11  }
  0x54   : > { %s3299_s26 = scalar_lea.hbm %s4321_s8, 256 }
  0x55   : > { %p3300_p9 = scmp.ne.s32.totalorder %s4321_s8, %s3299_s26  ;;  %p3306_p1 = scmp.lt.u32.totalorder %s3299_s26, %s4321_s8 }
  0x57   : > { %p3302_p12 = pnand %p3300_p9, %p3640_p13 }
  0x59   : > { %p3303_p2 = pneg %p3302_p12 }
  0x5b   : > { %p3308_p4 = pnand %p3306_p1, %p3303_p2 }
  0x5d   : > { %3311 = shalt.err (!%p3308_p4)
}
  0x5e   : > { %s3312_s22 = scalar_lea.vmem %s362_s13, 256  ;;  %p3320_p3 = scmp.lt.s32.totalorder %s362_s13, %s362_s13 }
  0x5f   : > { %p3313_p6 = scmp.ne.s32.totalorder %s362_s13, %s3312_s22  ;;  %p3321_p5 = scmp.lt.s32.totalorder %s3312_s22, %s3312_s22 }
  0x61   : > { %p3315_p8 = pnand %p3313_p6, %p3640_p13  ;;  %p3322_p7 = por %p3321_p5, %p3320_p3 }
  0x63   : > { %p3316_p0 = pneg %p3315_p8 }
  0x65   : > { %p3323_p10 = pnand %p3322_p7, %p3316_p0 }
  0x67   : > { %3326 = shalt.err (!%p3323_p10)
}
  0x68   : > { %s3498_s29 = smov 64   ;;  %s3499_s1 = smov 4  }
  0x69   : > { %3054 = dma.hbm_to_vmem [thread:$0]  (!%p3624_p11), %s4321_s8, 256, %s362_s13, [#allocation9], %s3498_s29, %s3498_s29, %s3499_s1  }
  0x6a   : > { %s3699_s11 = sadd.s32 1, %s3491_s20   ;;  %s40_s24 = sadd.s32 1, %s3487_s19 }
  0x6b   : > { %s37_s15 = ssub.s32 %s3491_s20, %s3699_s11  ;;  %p47_p9 = scmp.ne.s32.totalorder %s3487_s19, %s3483_s18 }
  0x6c   : > { %p38_p13 = scmp.eq.s32.totalorder %s37_s15, 0  ;;  %p48_p12 = scmp.eq.s32.totalorder %s3491_s20, 0 }
  0x6d   : > { %p3072_p2 = scmp.lt.s32.totalorder %s3491_s20, 2  ;;  %p4349_p4 = scmp.eq.s32.totalorder %s3594_s21, 1 }
  0x6e   : > { %s3709_s16 = scalar_select %p38_p13, %s3487_s19, %s40_s24  }
  0x6f   : > { %p49_p1 = por %p48_p12, %p47_p9  ;;  %p3713_p6 = por %p4349_p4, %p47_p9 }
  0x70   : > { %s375_s30 = sand.u32 1, %s3487_s19   ;;  %s2659_s12 = sshll.u32 %s3491_s20, 7 }
  0x71   : > { %s2658_s13 = sshll.u32 %s375_s30, 3  ;;  %s4351_s0 = sld [smem:[#allocation21_spill]] }
  0x72   : > { %s379_s29 = scalar_lea.vmem [#allocation2], %s2658_s13  ;;  %p3724_p11 = pnand %p3072_p2, %p49_p1 }
  0x73   : > { %s386_s1 = sshll.u32 %s379_s29, 4  ;;  %s376_s17 = scalar_lea.sflag [#allocation3], %s375_s30  ;;  %s3728_s1 = int_to_ptr.vmem [resolvable:$true] %s386_s1 }
  0x74   : > { %p3329_p0 = pneg %p3724_p11 }
  0x77   : > { %s3722_s22 = scalar_lea.hbm %s4351_s0, %s2659_s12  ;;  %s3332_s13 = scalar_lea.hbm %s4351_s0, 256 }
  0x78   : > { %s3327_s15 = scalar_lea.hbm %s3722_s22, 128  ;;  %p3333_p7 = scmp.lt.u32.totalorder %s3722_s22, %s4351_s0 }
  0x79   : > { %p3328_p8 = scmp.ne.s32.totalorder %s3722_s22, %s3327_s15  ;;  %p3334_p10 = scmp.lt.u32.totalorder %s3332_s13, %s3327_s15 }
  0x7a   : > { %p3336_p9 = scmp.lt.u32.totalorder %s3327_s15, %s3722_s22 }
  0x7b   : > { %p3330_p3 = pnand %p3329_p0, %p3328_p8  ;;  %p3335_p13 = por %p3334_p10, %p3333_p7 }
  0x7d   : > { %p3331_p5 = pneg %p3330_p3  ;;  %p3337_p12 = por %p3336_p9, %p3335_p13 }
  0x7f   : > { %p3338_p2 = pnand %p3337_p12, %p3331_p5 }
  0x81   : > { %3341 = shalt.err (!%p3338_p2)
}
  0x82   : > { %s3342_s30 = scalar_lea.vmem %s3728_s1, 128  ;;  %s3500_s29 = smov [#allocation2]  }
  0x83   : > { %p3343_p1 = scmp.ne.s32.totalorder %s3728_s1, %s3342_s30  ;;  %s3347_s24 = sshll.u32 %s3500_s29, 4  ;;  %s3348_s24 = int_to_ptr.vmem [resolvable:$false] %s3347_s24 }
  0x84   : > { %s3349_s12 = scalar_lea.vmem %s3348_s24, 256  ;;  %p3350_p3 = scmp.lt.s32.totalorder %s3728_s1, %s3348_s24 }
  0x85   : > { %p3345_p4 = pnand %p3343_p1, %p3329_p0  ;;  %p3351_p7 = scmp.lt.s32.totalorder %s3349_s12, %s3342_s30 }
  0x87   : > { %p3346_p8 = pneg %p3345_p4  ;;  %p3352_p10 = por %p3351_p7, %p3350_p3 }
  0x89   : > { %p3353_p13 = pnand %p3352_p10, %p3346_p8 }
  0x8b   : > { %3356 = shalt.err (!%p3353_p13)
}
  0x8c   : > { %3058 = dma.hbm_to_vmem [thread:$0]  (!%p3724_p11), %s3722_s22, 128, %s3728_s1, %s376_s17  }
  0x8d   : > { %p4353_p5 = scmp.ne.s32.totalorder %s4344_s25, 0 }
  0x8e   : > { %s3758_s15 = sand.u32 (!%p4353_p5), 1, %s3483_s18   ;;  %p4354_p0 = scmp.ne.s32.totalorder (!%p4353_p5), %s4341_s23, 0 }
  0x8f   : > { %395 = sbr.rel (%p4353_p5) target bundleno = 11001 (0x2af9), region = 56  ;;  %s4332_s13 = sshll.u32 (!%p4353_p5), %s3758_s15, 3 }
  0x90   : > { %s398_s14 = scalar_lea.sflag (!%p4353_p5), [#allocation3], %s3758_s15  ;;  %s401_s27 = scalar_lea.vmem (!%p4353_p5), [#allocation2], %s4332_s13 }
  0x96   : > { %3458 = dma.done.wait (%p4354_p0), %s398_s14, 128  }
  0x97   : > { %3460 = vsyncadd (%p4354_p0), %s398_s14, 4294967168  ;;  %p4355_p11 = scmp.eq.s32.totalorder %s3594_s21, 0 }
  0x99   : > { %3462 = dma.done.wait (%p4355_p11), [#allocation6], 320   ;;  %p4356_p9 = pmov %p4355_p11 }
  0x9b   : > { %3464 = vsyncadd (%p4356_p9), [#allocation6], 4294966976  ;;  %p4357_p12 = pmov %p4356_p9 }
  0x9c   : > { %p4358_p2 = pmov %p4356_p9 }
  0x9d   : > { %3466 = dma.done.wait (%p4357_p12), [#allocation9], 256  }
  0x9e   : > { %3468 = vsyncadd (%p4358_p2), [#allocation9], 4294967040  ;;  %vm463_vm0 = vcmask 261120   ;;  %v462_v0 = vld [vmem:[%s401_s27] sm:$0xff]  ;;  %s4359_s3 = sld [smem:[#allocation24_spill]]  ;;  %v3501_v8 = vmov 0.0   ;;  %v478_v12 = vlaneseq }
  0x9f   : > { %v464_v1 = vsel %vm463_vm0, %v462_v0, 0.0  ;;  %2825 = vmatprep.subr.bf16.mxu0 %v3501_v8  ;;  %2833 = vmatprep.subr.bf16.mxu1 %v3501_v8  ;;  %vm3502_vm1 = vmmov 0   ;;  %v3797_v16 = vld [vmem:[#allocation5] sm:$0x7]  ;;  %v3813_v25 = vld [vmem:[#allocation7] sm:$0xff]  ;;  %s3503_s28 = smov 112  }
  0xa0   : > { %465 = vadd.xlane.f32.xlu0 %v464_v1  ;;  %2829 = vmatprep.mubr.msk.bf16.mxu0 %vm3502_vm1, %v3501_v8  ;;  %v3792_v14 = vshrl.u32 %v478_v12, 7  ;;  %s3504_s17 = smov 96   ;;  %s3505_s30 = smov 80   ;;  %vm557_vm2 = vcmask 130048   ;;  %vm605_vm3 = vcmask 64512   ;;  %vm623_vm4 = vcmask 1043456  }
  0xa1   : > { %2835 = vmatprep.mubr.msk.bf16.mxu1 %vm3502_vm1, %v3501_v8  ;;  %s3506_s29 = smov 48   ;;  %s3507_s24 = smov 64   ;;  %vm1022_vm5 = vcmask 523264   ;;  %vm1845_vm6 = vcmask 253952   ;;  %vm2100_vm7 = vcmask 257027   ;;  %vm2272_vm8 = vcmask 259077  }
  0xa2   : > { %v3795_v15 = vsub.s32 0, %v3792_v14  ;;  %v3800_v17 = vsub.s32 1, %v3792_v14  ;;  %s4360_s4 = sld [smem:[#allocation25_spill]]  ;;  %s3509_s27 = smov 32   ;;  %vm1929_vm9 = vcmask 254977   ;;  %vm2015_vm10 = vcmask 256002  }
  0xa3   : > { %s4361_s23 = sshll.u32 %s3758_s15, 3  ;;  %vm2187_vm11 = vcmask 258052   ;;  %vm2359_vm12 = vcmask 260102   ;;  %s453_s22 = scalar_lea.vmem [#allocation11], %s3758_s15  ;;  %vm2444_vm13 = vcmask 261127  }
  0xa4   : > { %v3125_v7 = vld [vmem:[%s4359_s3] sm:$0xff]   ;;  %v3126_v9 = vld [vmem:[%s4359_s3 + $0x8] sm:$0xff]   ;;  %v481_v18 = vrot.slane %v3797_v16, %v3795_v15  ;;  %v486_v21 = vrot.slane %v3797_v16, %v3800_v17  ;;  %v497_v26 = vrot.slane %v3813_v25, %v3795_v15  ;;  %s2487_s1 = sshll.u32 %s453_s22, 4  ;;  %s2747_s12 = sshll.u32 %s3594_s21, 7  ;;  %s4203_s1 = int_to_ptr.vmem [resolvable:$true] %s2487_s1 }
  0xa5   : > { %2826 = vmatpush3.bf16.msra.mxu0 %v3125_v7  ;;  %s4362_s14 = sld [smem:[#allocation26_spill]]  ;;  %s3510_s0 = smov [#allocation11]  }
  0xa6   : > { %2827 = vmatprep.subr.bf16.mxu0 %v3501_v8 }
  0xa9   : > { %2828 = vmatpush3.bf16.msra.mxu0 %v3126_v9  ;;  %v3127_v9 = vld [vmem:[%s4360_s4] sm:$0xff]  }
  0xaa   : > { %2839 = vmatprep.subr.bf16.mxu0 %v3501_v8 }
 0x12d   : > { %v466_v2 = vpop.xlane.xlu0 %465 }
 0x12e   : > { %v468_v3 = vmul.f32 0.03125, %v466_v2 }
 0x130   : > { %v469_v4 = vsub.f32 %v462_v0, %v468_v3 }
 0x132   : > { %v470_v5 = vmul.f32 %v469_v4, %v469_v4 }
 0x134   : > { %v471_v6 = vsel %vm463_vm0, %v470_v5, 0.0 }
 0x135   : > { %472 = vadd.xlane.f32.xlu0 %v471_v6 }
 0x1c2   : > { %v473_v10 = vpop.xlane.xlu0 %472 }
 0x1c3   : > { %v474_v11 = vmul.f32 0.03125, %v473_v10  ;;  %v3128_v10 = vld [vmem:[%s4360_s4 + $0x8] sm:$0xff]  }
 0x1c5   : > { %v475_v13 = vadd.f32 1e-12, %v474_v11 }
 0x1c7   : > { %3149 = vrsqrt.f32 %v475_v13 }
 0x1d1   : > { %v3150_v19 = vpop.eup %3149 }
 0x1d2   : > { %v477_v20 = vmul.f32 %v3150_v19, %v469_v4 }
 0x1d4   : > { %v482_v22 = vmul.f32 %v481_v18, %v477_v20 }
 0x1d6   : > { %v3806_v23 = vadd.f32 %v486_v21, %v482_v22 }
 0x1d8   : > { %v489_v24 = vpack.c.bf16 %v3806_v23, %v3806_v23 }
 0x1da   : > { %2830 = vmatmul.mubr.msk.bf16.vlgmr.msra.gmra.mrb[0].mxu0 %vm463_vm0, %v489_v24 }
 0x1db   : > { %2841 = vmatprep.mubr.msk.bf16.mxu0 %vm3502_vm1, %v3501_v8 }
 0x2ad   : > { %v547_v27 = vpop.f32.mrb[0].mxu0 }
 0x2ae   : > { %v548_v28 = vadd.f32 %v547_v27, %v497_v26  ;;  %v2831_v29 = vpop.f32.mrb[1].mxu0 }
 0x2af   : > { %v550_v30 = vpop.f32.mrb[2].mxu0 }
 0x2b0   : > { %v553_v31 = vpack.c.bf16 %v548_v28, %v548_v28  ;;  %v2832_v32 = vpop.f32.mrb[3].mxu0 }
 0x2b2   : > { %670 = vrot.lane.b32.xlu0 %v553_v31, %s3503_s28  ;;  %555 = vrot.lane.b32.xlu1 %v553_v31, %s3504_s17 }
 0x2b6   : > { %672 = vrot.lane.b32.xlu1 %v553_v31, %s3505_s30 }
 0x324   : > { %v556_v33 = vpop.permute.xlu1 %555  ;;  %v671_v37 = vpop.permute.xlu0 %670 }
 0x325   : > { %v562_v34 = vsel %vm557_vm2, %v556_v33, 0 }
 0x326   : > { %2834 = vmatpush3.bf16.xpose.msra.mxu1 %v562_v34 }
 0x327   : > { %2845 = vmatprep.subr.bf16.mxu1 %v3501_v8 }
 0x328   : > { %v673_v35 = vpop.permute.xlu1 %672 }
 0x329   : > { %v678_v36 = vsel %vm557_vm2, %v673_v35, 0 }
 0x32d   : > { %2836 = vmatmul.mubr.msk.bf16.vlgmr.msra.gmra.mrb[0].mxu1 %vm557_vm2, %v553_v31 }
 0x32e   : > { %2846 = vmatpush3.bf16.xpose.msra.mxu1 %v678_v36  ;;  %2847 = vmatprep.mubr.msk.bf16.mxu1 %vm3502_vm1, %v3501_v8 }
 0x32f   : > { %2857 = vmatprep.subr.bf16.mxu1 %v3501_v8 }
 0x335   : > { %2848 = vmatmul.mubr.msk.bf16.vlgmr.msra.gmra.mrb[4].mxu1 %vm557_vm2, %v671_v37 }
 0x336   : > { %2859 = vmatprep.mubr.msk.bf16.mxu1 %vm3502_vm1, %v3501_v8  ;;  %2858 = vmatpush3.bf16.msra.mxu1 %v3128_v10 }
 0x337   : > { %2869 = vmatprep.subr.bf16.mxu1 %v3501_v8 }
 0x400   : > { %v598_v38 = vpop.f32.mrb[0].mxu1 }
 0x401   : > { %v604_v39 = vmul.f32 0.25, %v598_v38  ;;  %v2837_v40 = vpop.f32.mrb[1].mxu1 }
 0x402   : > { %v601_v41 = vpop.f32.mrb[2].mxu1 }
 0x403   : > { %v2838_v42 = vpop.f32.mrb[3].mxu1  ;;  %v606_v43 = vsel %vm605_vm3, %v604_v39, -inf }
 0x404   : > { %607 = vmax.xlane.f32.xlu1 %v606_v43 }
 0x408   : > { %v714_v44 = vpop.f32.mrb[4].mxu1 }
 0x409   : > { %v720_v45 = vmul.f32 0.25, %v714_v44  ;;  %v2849_v46 = vpop.f32.mrb[5].mxu1 }
 0x40a   : > { %v717_v47 = vpop.f32.mrb[6].mxu1 }
 0x40b   : > { %v2850_v48 = vpop.f32.mrb[7].mxu1  ;;  %v721_v49 = vsel %vm605_vm3, %v720_v45, -inf }
 0x40c   : > { %722 = vmax.xlane.f32.xlu0 %v721_v49  ;;  %v3874_v49 = vsub.s32 2, %v3792_v14 }
 0x422   : > { %733 = vrot.lane.b32.xlu0 %v553_v31, %s3506_s29 }
 0x491   : > { %v608_v50 = vpop.xlane.xlu1 %607 }
 0x492   : > { %v609_v51 = vsub.f32 %v604_v39, %v608_v50  ;;  %v909_v50 = vsub.s32 3, %v3792_v14 }
 0x494   : > { %v610_v52 = vmul.f32 1.442695, %v609_v51  ;;  %v905_v51 = vrot.slane %v3813_v25, %v3874_v49 }
 0x496   : > { %3151 = vpow2.f32 %v610_v52 }
 0x499   : > { %v723_v53 = vpop.xlane.xlu0 %722 }
 0x49a   : > { %v724_v54 = vsub.f32 %v720_v45, %v723_v53  ;;  %v3129_v45 = vld [vmem:[%s4318_s5] sm:$0xff]  }
 0x49c   : > { %v725_v55 = vmul.f32 1.442695, %v724_v54  ;;  %v910_v54 = vrot.slane %v3813_v25, %v909_v50 }
 0x49d   : > { %v734_v2 = vpop.permute.xlu0 %733 }
 0x49e   : > { %3153 = vpow2.f32 %v725_v55  ;;  %v739_v4 = vsel %vm623_vm4, %v734_v2, 0 }
 0x4a0   : > { %v3152_v56 = vpop.eup %3151 }
 0x4a1   : > { %v612_v57 = vsel %vm605_vm3, %v3152_v56, 0.0 }
 0x4a2   : > { %613 = vadd.xlane.f32.xlu1 %v612_v57 }
 0x4a8   : > { %v3154_v58 = vpop.eup %3153 }
 0x4a9   : > { %v727_v59 = vsel %vm605_vm3, %v3154_v58, 0.0 }
 0x4aa   : > { %728 = vadd.xlane.f32.xlu1 %v727_v59  ;;  %v3132_v59 = vld [vmem:[%s4319_s6 + $0x8] sm:$0xff]  }
 0x4bb   : > { %618 = vrot.lane.b32.xlu1 %v553_v31, %s3507_s24  ;;  %v886_v31 = vrot.slane %v3813_v25, %v3800_v17 }
 0x52f   : > { %v614_v60 = vpop.xlane.xlu1 %613 }
 0x530   : > { %3155 = vrcp.f32 %v614_v60  ;;  %v3133_v60 = vld [vmem:[%s4319_s6 + $0x10] sm:$0xff]  }
 0x537   : > { %v729_v61 = vpop.xlane.xlu1 %728 }
 0x538   : > { %3157 = vrcp.f32 %v729_v61  ;;  %v3134_v61 = vld [vmem:[%s4319_s6 + $0x18] sm:$0xff]  }
 0x53a   : > { %v3156_v62 = vpop.eup %3155 }
 0x53b   : > { %v616_v63 = vmul.f32 %v3156_v62, %v3152_v56  ;;  %v619_v0 = vpop.permute.xlu1 %618  ;;  %v919_v62 = vsub.s32 4, %v3792_v14 }
 0x53c   : > { %v625_v1 = vsel %vm623_vm4, %v619_v0, 0 }
 0x53d   : > { %2840 = vmatpush3.bf16.msra.mxu0 %v625_v1  ;;  %v617_v3 = vpack.c.bf16 %v616_v63, %v616_v63  ;;  %v920_v63 = vrot.slane %v3813_v25, %v919_v62 }
 0x53e   : > { %2851 = vmatprep.subr.bf16.mxu0 %v3501_v8 }
 0x540   : > { %2842 = vmatmul.mubr.msk.bf16.vlgmr.msra.gmra.mrb[4].mxu0 %vm605_vm3, %v617_v3 }
 0x541   : > { %2852 = vmatpush3.bf16.msra.mxu0 %v739_v4  ;;  %2853 = vmatprep.mubr.msk.bf16.mxu0 %vm3502_vm1, %v3501_v8 }
 0x542   : > { %v3158_v5 = vpop.eup %3157  ;;  %2863 = vmatprep.subr.bf16.mxu0 %v3501_v8 }
 0x543   : > { %v731_v6 = vmul.f32 %v3158_v5, %v3154_v58  ;;  %v3131_v58 = vld [vmem:[%s4319_s6] sm:$0xff]  }
 0x545   : > { %v732_v7 = vpack.c.bf16 %v731_v6, %v731_v6 }
 0x548   : > { %2854 = vmatmul.mubr.msk.bf16.vlgmr.msra.gmra.mrb[8].mxu0 %vm605_vm3, %v732_v7 }
 0x549   : > { %2865 = vmatprep.mubr.msk.bf16.mxu0 %vm3502_vm1, %v3501_v8  ;;  %2864 = vmatpush3.bf16.msra.mxu0 %v3127_v9 }
 0x54a   : > { %2877 = vmatprep.subr.bf16.mxu0 %v3501_v8 }
 0x613   : > { %v661_v11 = vpop.f32.mrb[4].mxu0 }
 0x614   : > { %v667_v12 = vpack.c.bf16 %v661_v11, %v661_v11  ;;  %v2843_v13 = vpop.f32.mrb[5].mxu0 }
 0x615   : > { %v664_v18 = vpop.f32.mrb[6].mxu0 }
 0x616   : > { %v2844_v19 = vpop.f32.mrb[7].mxu0  ;;  %2866 = vmatmul.mubr.msk.bf16.vlgmr.msra.gmra.mrb[12].mxu0 %vm557_vm2, %v667_v12 }
 0x617   : > { %2885 = vmatprep.mubr.msk.bf16.mxu0 %vm3502_vm1, %v3501_v8  ;;  %2878 = vmatpush3.bf16.msra.mxu0 %v3131_v58 }
 0x618   : > { %2879 = vmatprep.subr.bf16.mxu0 %v3501_v8 }
 0x61b   : > { %v775_v20 = vpop.f32.mrb[8].mxu0  ;;  %2880 = vmatpush3.bf16.msra.mxu0 %v3132_v59 }
 0x61c   : > { %v781_v21 = vpack.c.bf16 %v775_v20, %v775_v20  ;;  %v2855_v22 = vpop.f32.mrb[9].mxu0  ;;  %2881 = vmatprep.subr.bf16.mxu0 %v3501_v8  ;;  %v996_v20 = vsub.s32 5, %v3792_v14 }
 0x61d   : > { %v778_v24 = vpop.f32.mrb[10].mxu0 }
 0x61e   : > { %v2856_v26 = vpop.f32.mrb[11].mxu0  ;;  %2860 = vmatmul.mubr.msk.bf16.vlgmr.msra.gmra.mrb[8].mxu1 %vm557_vm2, %v781_v21  ;;  %v997_v21 = vrot.slane %v3813_v25, %v996_v20 }
 0x61f   : > { %2873 = vmatprep.mubr.msk.bf16.mxu1 %vm3502_vm1, %v3501_v8  ;;  %2870 = vmatpush3.bf16.msra.mxu1 %v3129_v45 }
 0x620   : > { %2871 = vmatprep.subr.bf16.mxu1 %v3501_v8  ;;  %2882 = vmatpush3.bf16.msra.mxu0 %v3133_v60 }
 0x621   : > { %2883 = vmatprep.subr.bf16.mxu0 %v3501_v8 }
 0x624   : > { %2884 = vmatpush3.bf16.msra.mxu0 %v3134_v61 }
 0x625   : > { %2903 = vmatprep.subr.bf16.mxu0 %v3501_v8 }
 0x6e9   : > { %v877_v27 = vpop.f32.mrb[12].mxu0 }
 0x6ea   : > { %v2867_v28 = vpop.f32.mrb[13].mxu0 }
 0x6eb   : > { %v880_v29 = vpop.f32.mrb[14].mxu0 }
 0x6ec   : > { %v2868_v30 = vpop.f32.mrb[15].mxu0 }
 0x6f1   : > { %v828_v32 = vpop.f32.mrb[8].mxu1 }
 0x6f2   : > { %v878_v33 = vadd.f32 %v877_v27, %v828_v32  ;;  %v2861_v34 = vpop.f32.mrb[9].mxu1 }
 0x6f3   : > { %v831_v35 = vpop.f32.mrb[10].mxu1 }
 0x6f4   : > { %v887_v36 = vadd.f32 %v886_v31, %v878_v33  ;;  %v2862_v37 = vpop.f32.mrb[11].mxu1 }
 0x6f5   : > { %v3136_v37 = vld [vmem:[%s4359_s3 + $0x18] sm:$0xff]  }
 0x6f6   : > { %v888_v38 = vadd.f32 %v887_v36, %v3806_v23  ;;  %v3130_v23 = vld [vmem:[%s4318_s5 + $0x8] sm:$0xff]   ;;  %v3135_v36 = vld [vmem:[%s4359_s3 + $0x10] sm:$0xff]  }
 0x6f7   : > { %2872 = vmatpush3.bf16.msra.mxu1 %v3130_v23 }
 0x6f8   : > { %v889_v39 = vsel %vm463_vm0, %v888_v38, 0.0  ;;  %2889 = vmatprep.subr.bf16.mxu1 %v3501_v8 }
 0x6f9   : > { %890 = vadd.xlane.f32.xlu1 %v889_v39 }
 0x786   : > { %v891_v40 = vpop.xlane.xlu1 %890 }
 0x787   : > { %v892_v41 = vmul.f32 0.03125, %v891_v40 }
 0x789   : > { %v893_v42 = vsub.f32 %v888_v38, %v892_v41  ;;  %v1082_v41 = vsub.s32 6, %v3792_v14 }
 0x78b   : > { %v894_v43 = vmul.f32 %v893_v42, %v893_v42 }
 0x78d   : > { %v895_v44 = vsel %vm463_vm0, %v894_v43, 0.0  ;;  %v1083_v43 = vrot.slane %v3813_v25, %v1082_v41 }
 0x78e   : > { %896 = vadd.xlane.f32.xlu0 %v895_v44 }
 0x81b   : > { %v897_v46 = vpop.xlane.xlu0 %896 }
 0x81c   : > { %v898_v47 = vmul.f32 0.03125, %v897_v46 }
 0x81e   : > { %v899_v48 = vadd.f32 1e-12, %v898_v47 }
 0x820   : > { %3159 = vrsqrt.f32 %v899_v48 }
 0x82a   : > { %v3160_v52 = vpop.eup %3159 }
 0x82b   : > { %v901_v53 = vmul.f32 %v3160_v52, %v893_v42  ;;  %v1087_v42 = vsub.s32 7, %v3792_v14 }
 0x82d   : > { %v906_v55 = vmul.f32 %v905_v51, %v901_v53  ;;  %v1088_v23 = vrot.slane %v3813_v25, %v1087_v42  ;;  %v3937_v51 = vld [vmem:[#allocation7 + $0x8] sm:$0xff] }
 0x82e   : > { %v1101_v52 = vrot.slane %v3937_v51, %v3795_v15 }
 0x82f   : > { %v911_v56 = vadd.f32 %v910_v54, %v906_v55 }
 0x831   : > { %v912_v57 = vpack.c.bf16 %v911_v56, %v911_v56 }
 0x833   : > { %2874 = vmatmul.mubr.msk.bf16.vlgmr.msra.gmra.mrb[12].mxu1 %vm463_vm0, %v912_v57 }
 0x834   : > { %2893 = vmatprep.mubr.msk.bf16.mxu1 %vm3502_vm1, %v3501_v8  ;;  %2890 = vmatpush3.bf16.msra.mxu1 %v3135_v36 }
 0x835   : > { %2891 = vmatprep.subr.bf16.mxu1 %v3501_v8 }
 0x838   : > { %2892 = vmatpush3.bf16.msra.mxu1 %v3136_v37 }
 0x839   : > { %2897 = vmatprep.subr.bf16.mxu1 %v3501_v8 }
 0x906   : > { %v970_v0 = vpop.f32.mrb[12].mxu1 }
 0x907   : > { %v971_v1 = vadd.f32 %v970_v0, %v920_v63  ;;  %v2875_v2 = vpop.f32.mrb[13].mxu1 }
 0x908   : > { %v973_v3 = vpop.f32.mrb[14].mxu1 }
 0x909   : > { %v977_v4 = vmul.f32 0.044715, %v971_v1  ;;  %v2876_v5 = vpop.f32.mrb[15].mxu1  ;;  %v976_v12 = vmul.f32 0.5, %v971_v1 }
 0x90b   : > { %v978_v6 = vmul.f32 %v977_v4, %v971_v1 }
 0x90d   : > { %v979_v7 = vmul.f32 %v978_v6, %v971_v1 }
 0x90f   : > { %v980_v9 = vadd.f32 %v979_v7, %v971_v1 }
 0x911   : > { %v981_v10 = vmul.f32 0.7978846, %v980_v9 }
 0x913   : > { %3161 = vtanh.f32 %v981_v10 }
 0x91d   : > { %v3162_v11 = vpop.eup %3161 }
 0x91e   : > { %v983_v13 = vadd.f32 1.0, %v3162_v11 }
 0x920   : > { %v984_v18 = vmul.f32 %v983_v13, %v976_v12 }
 0x922   : > { %v985_v19 = vpack.c.bf16 %v984_v18, %v984_v18 }
 0x924   : > { %2886 = vmatmul.mubr.msk.bf16.vlgmr.msra.gmra.mrb[16].mxu0 %vm1022_vm5, %v985_v19 }
 0x925   : > { %2905 = vmatprep.mubr.msk.bf16.mxu0 %vm3502_vm1, %v3501_v8 }
 0x9f7   : > { %v1060_v22 = vpop.f32.mrb[16].mxu0 }
 0x9f8   : > { %v1061_v24 = vadd.f32 %v1060_v22, %v997_v21  ;;  %v2887_v26 = vpop.f32.mrb[17].mxu0 }
 0x9f9   : > { %v1063_v27 = vpop.f32.mrb[18].mxu0 }
 0x9fa   : > { %v2888_v28 = vpop.f32.mrb[19].mxu0  ;;  %v1066_v29 = vadd.f32 %v1061_v24, %v911_v56 }
 0x9fc   : > { %v1067_v30 = vsel %vm463_vm0, %v1066_v29, 0.0 }
 0x9fd   : > { %1068 = vadd.xlane.f32.xlu1 %v1067_v30 }
 0xa8a   : > { %v1069_v31 = vpop.xlane.xlu1 %1068 }
 0xa8b   : > { %v1070_v32 = vmul.f32 0.03125, %v1069_v31 }
 0xa8d   : > { %v1071_v33 = vsub.f32 %v1066_v29, %v1070_v32 }
 0xa8f   : > { %v1072_v34 = vmul.f32 %v1071_v33, %v1071_v33 }
 0xa91   : > { %v1073_v35 = vsel %vm463_vm0, %v1072_v34, 0.0 }
 0xa92   : > { %1074 = vadd.xlane.f32.xlu1 %v1073_v35 }
 0xb1f   : > { %v1075_v38 = vpop.xlane.xlu1 %1074 }
 0xb20   : > { %v1076_v39 = vmul.f32 0.03125, %v1075_v38 }
 0xb22   : > { %v1077_v40 = vadd.f32 1e-12, %v1076_v39 }
 0xb24   : > { %3163 = vrsqrt.f32 %v1077_v40 }
 0xb2e   : > { %v3164_v44 = vpop.eup %3163 }
 0xb2f   : > { %v1079_v45 = vmul.f32 %v3164_v44, %v1071_v33  ;;  %v3138_v44 = vld [vmem:[%s4360_s4 + $0x18] sm:$0xff]  }
 0xb31   : > { %v1084_v46 = vmul.f32 %v1083_v43, %v1079_v45  ;;  %v3137_v43 = vld [vmem:[%s4360_s4 + $0x10] sm:$0xff]   ;;  %s3357_s4 = scalar_lea.vmem %s4203_s1, 16 }
 0xb32   : > { %p3358_p1 = scmp.ne.s32.totalorder %s4203_s1, %s3357_s4 }
 0xb33   : > { %v3930_v47 = vadd.f32 %v1088_v23, %v1084_v46 }
 0xb34   : > { %p3359_p4 = pnand %p3358_p1, %p3713_p6 }
 0xb35   : > { %v1092_v48 = vpack.c.bf16 %v3930_v47, %v3930_v47 }
 0xb36   : > { %p3360_p8 = pneg %p3359_p4 }
 0xb37   : > { %2894 = vmatmul.mubr.msk.bf16.vlgmr.msra.gmra.mrb[16].mxu1 %vm463_vm0, %v1092_v48 }
 0xb38   : > { %2899 = vmatprep.mubr.msk.bf16.mxu1 %vm3502_vm1, %v3501_v8 }
 0xc0a   : > { %v1151_v53 = vpop.f32.mrb[16].mxu1 }
 0xc0b   : > { %v1152_v54 = vadd.f32 %v1151_v53, %v1101_v52  ;;  %v2895_v55 = vpop.f32.mrb[17].mxu1 }
 0xc0c   : > { %v1154_v25 = vpop.f32.mrb[18].mxu1 }
 0xc0d   : > { %v1157_v56 = vpack.c.bf16 %v1152_v54, %v1152_v54  ;;  %v2896_v57 = vpop.f32.mrb[19].mxu1 }
 0xc0f   : > { %1274 = vrot.lane.b32.xlu0 %v1157_v56, %s3505_s30  ;;  %1159 = vrot.lane.b32.xlu1 %v1157_v56, %s3504_s17  ;;  %s2748_s30 = sshll.u32 %s3594_s21, 4 }
 0xc10   : > { %s4218_s2 = scalar_lea.hbm %s4362_s14, %s2748_s30 }
 0xc13   : > { %1272 = vrot.lane.b32.xlu1 %v1157_v56, %s3503_s28  ;;  %s4171_s28 = scalar_lea.vmem [#allocation10], %s4361_s23 }
 0xc81   : > { %v1160_v58 = vpop.permute.xlu1 %1159  ;;  %v1275_v60 = vpop.permute.xlu0 %1274 }
 0xc82   : > { %v1165_v59 = vsel %vm557_vm2, %v1160_v58, 0  ;;  %v1280_v15 = vsel %vm557_vm2, %v1275_v60, 0 }
 0xc83   : > { %2898 = vmatpush3.bf16.xpose.msra.mxu1 %v1165_v59 }
 0xc84   : > { %2909 = vmatprep.subr.bf16.mxu1 %v3501_v8 }
 0xc85   : > { %v1273_v61 = vpop.permute.xlu1 %1272 }
 0xc8a   : > { %2900 = vmatmul.mubr.msk.bf16.vlgmr.msra.gmra.mrb[20].mxu1 %vm557_vm2, %v1157_v56 }
 0xc8b   : > { %2910 = vmatpush3.bf16.xpose.msra.mxu1 %v1280_v15  ;;  %2911 = vmatprep.mubr.msk.bf16.mxu1 %vm3502_vm1, %v3501_v8  ;;  %v1488_v15 = vrot.slane %v3937_v51, %v3800_v17  ;;  %v3139_v17 = vld [vmem:[%s4318_s5 + $0x10] sm:$0xff]  }
 0xc8c   : > { %2921 = vmatprep.subr.bf16.mxu1 %v3501_v8 }
 0xc92   : > { %2912 = vmatmul.mubr.msk.bf16.vlgmr.msra.gmra.mrb[24].mxu1 %vm557_vm2, %v1273_v61 }
 0xc93   : > { %2923 = vmatprep.mubr.msk.bf16.mxu1 %vm3502_vm1, %v3501_v8  ;;  %2922 = vmatpush3.bf16.msra.mxu1 %v3138_v44 }
 0xc94   : > { %2933 = vmatprep.subr.bf16.mxu1 %v3501_v8 }
 0xd5d   : > { %v1201_v63 = vpop.f32.mrb[20].mxu1 }
 0xd5e   : > { %v1207_v0 = vmul.f32 0.25, %v1201_v63  ;;  %v2901_v1 = vpop.f32.mrb[21].mxu1 }
 0xd5f   : > { %v1204_v2 = vpop.f32.mrb[22].mxu1 }
 0xd60   : > { %v2902_v3 = vpop.f32.mrb[23].mxu1  ;;  %v1208_v4 = vsel %vm605_vm3, %v1207_v0, -inf }
 0xd61   : > { %1209 = vmax.xlane.f32.xlu1 %v1208_v4 }
 0xd65   : > { %v1316_v5 = vpop.f32.mrb[24].mxu1 }
 0xd66   : > { %v1322_v6 = vmul.f32 0.25, %v1316_v5  ;;  %v2913_v7 = vpop.f32.mrb[25].mxu1 }
 0xd67   : > { %v1319_v9 = vpop.f32.mrb[26].mxu1 }
 0xd68   : > { %v2914_v10 = vpop.f32.mrb[27].mxu1  ;;  %v1323_v11 = vsel %vm605_vm3, %v1322_v6, -inf }
 0xd69   : > { %1324 = vmax.xlane.f32.xlu0 %v1323_v11 }
 0xdee   : > { %v1210_v12 = vpop.xlane.xlu1 %1209 }
 0xdef   : > { %v1211_v13 = vsub.f32 %v1207_v0, %v1210_v12  ;;  %v3140_v12 = vld [vmem:[%s4318_s5 + $0x18] sm:$0xff]  }
 0xdf1   : > { %v1212_v18 = vmul.f32 1.442695, %v1211_v13 }
 0xdf3   : > { %3165 = vpow2.f32 %v1212_v18 }
 0xdf6   : > { %v1325_v19 = vpop.xlane.xlu0 %1324 }
 0xdf7   : > { %v1326_v21 = vsub.f32 %v1322_v6, %v1325_v19  ;;  %v1507_v19 = vrot.slane %v3937_v51, %v3874_v49 }
 0xdf9   : > { %v1327_v22 = vmul.f32 1.442695, %v1326_v21 }
 0xdfb   : > { %3167 = vpow2.f32 %v1327_v22 }
 0xdfd   : > { %v3166_v24 = vpop.eup %3165 }
 0xdfe   : > { %v1214_v26 = vsel %vm605_vm3, %v3166_v24, 0.0 }
 0xdff   : > { %1215 = vadd.xlane.f32.xlu0 %v1214_v26 }
 0xe05   : > { %v3168_v27 = vpop.eup %3167 }
 0xe06   : > { %v1329_v28 = vsel %vm605_vm3, %v3168_v27, 0.0 }
 0xe07   : > { %1330 = vadd.xlane.f32.xlu1 %v1329_v28 }
 0xe15   : > { %1220 = vrot.lane.b32.xlu0 %v1157_v56, %s3507_s24 }
 0xe18   : > { %1335 = vrot.lane.b32.xlu1 %v1157_v56, %s3506_s29  ;;  %s4333_s29 = scalar_lea.vmem [#allocation13], %s3758_s15 }
 0xe19   : > { %s2500_s25 = sshll.u32 %s4333_s29, 4  ;;  %s4208_s29 = scalar_lea.hbm %s4322_s9, %s2747_s12  ;;  %s4220_s25 = int_to_ptr.vmem [resolvable:$true] %s2500_s25 }
 0xe1a   : > { %s3361_s12 = sshll.u32 %s3510_s0, 4  ;;  %s3362_s12 = int_to_ptr.vmem [resolvable:$false] %s3361_s12 }
 0xe1b   : > { %p3364_p3 = scmp.lt.s32.totalorder %s4203_s1, %s3362_s12 }
 0xe8c   : > { %v1216_v29 = vpop.xlane.xlu0 %1215 }
 0xe8d   : > { %3169 = vrcp.f32 %v1216_v29  ;;  %v3141_v29 = vld [vmem:[%s4319_s6 + $0x20] sm:$0xff]  }
 0xe90   : > { %v1221_v30 = vpop.permute.xlu0 %1220 }
 0xe91   : > { %v1226_v31 = vsel %vm623_vm4, %v1221_v30, 0  ;;  %v3142_v30 = vld [vmem:[%s4319_s6 + $0x28] sm:$0xff]  }
 0xe92   : > { %2904 = vmatpush3.bf16.msra.mxu0 %v1226_v31  ;;  %v3144_v31 = vld [vmem:[%s4319_s6 + $0x38] sm:$0xff]  }
 0xe93   : > { %2915 = vmatprep.subr.bf16.mxu0 %v3501_v8 }
 0xe94   : > { %v1331_v32 = vpop.xlane.xlu1 %1330 }
 0xe95   : > { %3171 = vrcp.f32 %v1331_v32  ;;  %v1523_v32 = vrot.slane %v3937_v51, %v919_v62  ;;  %v1601_v62 = vrot.slane %v3937_v51, %v996_v20  ;;  %v3145_v20 = vld [vmem:[%s4320_s7] sm:$0xff]  }
 0xe97   : > { %v3170_v33 = vpop.eup %3169 }
 0xe98   : > { %v1218_v34 = vmul.f32 %v3170_v33, %v3166_v24  ;;  %v1336_v35 = vpop.permute.xlu1 %1335  ;;  %v1512_v24 = vrot.slane %v3937_v51, %v909_v50  ;;  %v3143_v50 = vld [vmem:[%s4319_s6 + $0x30] sm:$0xff]  }
 0xe99   : > { %v1341_v37 = vsel %vm623_vm4, %v1336_v35, 0 }
 0xe9a   : > { %v1219_v36 = vpack.c.bf16 %v1218_v34, %v1218_v34 }
 0xe9c   : > { %2906 = vmatmul.mubr.msk.bf16.vlgmr.msra.gmra.mrb[20].mxu0 %vm605_vm3, %v1219_v36 }
 0xe9d   : > { %2916 = vmatpush3.bf16.msra.mxu0 %v1341_v37  ;;  %2917 = vmatprep.mubr.msk.bf16.mxu0 %vm3502_vm1, %v3501_v8 }
 0xe9e   : > { %2927 = vmatprep.subr.bf16.mxu0 %v3501_v8 }
 0xe9f   : > { %v3172_v38 = vpop.eup %3171 }
 0xea0   : > { %v1333_v39 = vmul.f32 %v3172_v38, %v3168_v27 }
 0xea2   : > { %v1334_v40 = vpack.c.bf16 %v1333_v39, %v1333_v39 }
 0xea4   : > { %2918 = vmatmul.mubr.msk.bf16.vlgmr.msra.gmra.mrb[24].mxu0 %vm605_vm3, %v1334_v40 }
 0xea5   : > { %2929 = vmatprep.mubr.msk.bf16.mxu0 %vm3502_vm1, %v3501_v8  ;;  %2928 = vmatpush3.bf16.msra.mxu0 %v3137_v43 }
 0xea6   : > { %2941 = vmatprep.subr.bf16.mxu0 %v3501_v8 }
 0xf6f   : > { %v1262_v45 = vpop.f32.mrb[20].mxu0 }
 0xf70   : > { %v1268_v23 = vpack.c.bf16 %v1262_v45, %v1262_v45  ;;  %v2907_v46 = vpop.f32.mrb[21].mxu0 }
 0xf71   : > { %v1265_v48 = vpop.f32.mrb[22].mxu0 }
 0xf72   : > { %v2908_v52 = vpop.f32.mrb[23].mxu0  ;;  %2930 = vmatmul.mubr.msk.bf16.vlgmr.msra.gmra.mrb[28].mxu0 %vm557_vm2, %v1268_v23 }
 0xf73   : > { %2949 = vmatprep.mubr.msk.bf16.mxu0 %vm3502_vm1, %v3501_v8  ;;  %2942 = vmatpush3.bf16.msra.mxu0 %v3141_v29 }
 0xf74   : > { %2943 = vmatprep.subr.bf16.mxu0 %v3501_v8 }
 0xf77   : > { %v1377_v53 = vpop.f32.mrb[24].mxu0  ;;  %2944 = vmatpush3.bf16.msra.mxu0 %v3142_v30 }
 0xf78   : > { %v1383_v54 = vpack.c.bf16 %v1377_v53, %v1377_v53  ;;  %v2919_v55 = vpop.f32.mrb[25].mxu0  ;;  %2945 = vmatprep.subr.bf16.mxu0 %v3501_v8 }
 0xf79   : > { %v1380_v25 = vpop.f32.mrb[26].mxu0 }
 0xf7a   : > { %v2920_v56 = vpop.f32.mrb[27].mxu0  ;;  %2924 = vmatmul.mubr.msk.bf16.vlgmr.msra.gmra.mrb[28].mxu1 %vm557_vm2, %v1383_v54 }
 0xf7b   : > { %2937 = vmatprep.mubr.msk.bf16.mxu1 %vm3502_vm1, %v3501_v8  ;;  %2934 = vmatpush3.bf16.msra.mxu1 %v3139_v17 }
 0xf7c   : > { %2935 = vmatprep.subr.bf16.mxu1 %v3501_v8  ;;  %2946 = vmatpush3.bf16.msra.mxu0 %v3143_v50 }
 0xf7d   : > { %2947 = vmatprep.subr.bf16.mxu0 %v3501_v8 }
 0xf7f   : > { %2936 = vmatpush3.bf16.msra.mxu1 %v3140_v12 }
 0xf80   : > { %2953 = vmatprep.subr.bf16.mxu1 %v3501_v8  ;;  %2948 = vmatpush3.bf16.msra.mxu0 %v3144_v31 }
 0xf81   : > { %2969 = vmatprep.subr.bf16.mxu0 %v3501_v8 }
0x1045   : > { %v1479_v57 = vpop.f32.mrb[28].mxu0 }
0x1046   : > { %v2931_v58 = vpop.f32.mrb[29].mxu0 }
0x1047   : > { %v1482_v59 = vpop.f32.mrb[30].mxu0 }
0x1048   : > { %v2932_v60 = vpop.f32.mrb[31].mxu0 }
0x104d   : > { %v1430_v61 = vpop.f32.mrb[28].mxu1 }
0x104e   : > { %v1480_v63 = vadd.f32 %v1479_v57, %v1430_v61  ;;  %v2925_v0 = vpop.f32.mrb[29].mxu1 }
0x104f   : > { %v1433_v1 = vpop.f32.mrb[30].mxu1  ;;  %v3146_v0 = vld [vmem:[%s4320_s7 + $0x8] sm:$0xff]  }
0x1050   : > { %v1489_v2 = vadd.f32 %v1488_v15, %v1480_v63  ;;  %v2926_v3 = vpop.f32.mrb[31].mxu1  ;;  %v4040_v1 = vld [vmem:[#allocation8] sm:$0xff]  }
0x1052   : > { %v1490_v4 = vadd.f32 %v1489_v2, %v3930_v47  ;;  %v4044_v2 = vld [vmem:[#allocation8 + $0x8] sm:$0xff]  }
0x1054   : > { %v1491_v5 = vsel %vm463_vm0, %v1490_v4, 0.0 }
0x1055   : > { %1492 = vadd.xlane.f32.xlu1 %v1491_v5 }
0x10e2   : > { %v1493_v6 = vpop.xlane.xlu1 %1492 }
0x10e3   : > { %v1494_v7 = vmul.f32 0.03125, %v1493_v6  ;;  %v1686_v6 = vrot.slane %v3937_v51, %v1082_v41  ;;  %v3508_v41 = vmov 0  }
0x10e5   : > { %v1495_v9 = vsub.f32 %v1490_v4, %v1494_v7 }
0x10e7   : > { %v1496_v10 = vmul.f32 %v1495_v9, %v1495_v9 }
0x10e9   : > { %v1497_v11 = vsel %vm463_vm0, %v1496_v10, 0.0  ;;  %v1691_v10 = vrot.slane %v3937_v51, %v1087_v42 }
0x10ea   : > { %1498 = vadd.xlane.f32.xlu0 %v1497_v11 }
0x1177   : > { %v1499_v47 = vpop.xlane.xlu0 %1498 }
0x1178   : > { %v1500_v13 = vmul.f32 0.03125, %v1499_v47  ;;  %v1701_v47 = vrot.slane %v3797_v16, %v3874_v49 }
0x117a   : > { %v1501_v18 = vadd.f32 1e-12, %v1500_v13 }
0x117c   : > { %3173 = vrsqrt.f32 %v1501_v18 }
0x1186   : > { %v3174_v21 = vpop.eup %3173 }
0x1187   : > { %v1503_v22 = vmul.f32 %v3174_v21, %v1495_v9 }
0x1189   : > { %v1508_v26 = vmul.f32 %v1507_v19, %v1503_v22 }
0x118b   : > { %v1513_v27 = vadd.f32 %v1512_v24, %v1508_v26 }
0x118d   : > { %v1514_v28 = vpack.c.bf16 %v1513_v27, %v1513_v27 }
0x118f   : > { %2938 = vmatmul.mubr.msk.bf16.vlgmr.msra.gmra.mrb[32].mxu1 %vm463_vm0, %v1514_v28 }
0x1190   : > { %2957 = vmatprep.mubr.msk.bf16.mxu1 %vm3502_vm1, %v3501_v8  ;;  %2954 = vmatpush3.bf16.msra.mxu1 %v3145_v20 }
0x1191   : > { %2955 = vmatprep.subr.bf16.mxu1 %v3501_v8 }
0x1194   : > { %2956 = vmatpush3.bf16.msra.mxu1 %v3146_v0 }
0x1195   : > { %2961 = vmatprep.subr.bf16.mxu1 %v3501_v8 }
0x1262   : > { %v1573_v33 = vpop.f32.mrb[32].mxu1 }
0x1263   : > { %v1574_v34 = vadd.f32 %v1573_v33, %v1523_v32  ;;  %v2939_v35 = vpop.f32.mrb[33].mxu1 }
0x1264   : > { %v1576_v36 = vpop.f32.mrb[34].mxu1 }
0x1265   : > { %v1580_v37 = vmul.f32 0.044715, %v1574_v34  ;;  %v2940_v38 = vpop.f32.mrb[35].mxu1  ;;  %v1579_v23 = vmul.f32 0.5, %v1574_v34 }
0x1267   : > { %v1581_v39 = vmul.f32 %v1580_v37, %v1574_v34 }
0x1269   : > { %v1582_v40 = vmul.f32 %v1581_v39, %v1574_v34 }
0x126b   : > { %v1583_v43 = vadd.f32 %v1582_v40, %v1574_v34 }
0x126d   : > { %v1584_v44 = vmul.f32 0.7978846, %v1583_v43 }
0x126f   : > { %3175 = vtanh.f32 %v1584_v44 }
0x1279   : > { %v3176_v45 = vpop.eup %3175 }
0x127a   : > { %v1586_v46 = vadd.f32 1.0, %v3176_v45 }
0x127c   : > { %v1587_v48 = vmul.f32 %v1586_v46, %v1579_v23 }
0x127e   : > { %v1588_v52 = vpack.c.bf16 %v1587_v48, %v1587_v48 }
0x1280   : > { %2950 = vmatmul.mubr.msk.bf16.vlgmr.msra.gmra.mrb[32].mxu0 %vm1022_vm5, %v1588_v52 }
0x1281   : > { %2973 = vmatprep.mubr.msk.bf16.mxu0 %vm3502_vm1, %v3501_v8  ;;  %2970 = vmatpush3.bf16.msra.mxu0 %v4040_v1 }
0x1282   : > { %2971 = vmatprep.subr.bf16.mxu0 %v3501_v8 }
0x1285   : > { %2972 = vmatpush3.bf16.msra.mxu0 %v4044_v2 }
0x1286   : > { %2985 = vmatprep.subr.bf16.mxu0 %v3501_v8 }
0x1353   : > { %v1663_v53 = vpop.f32.mrb[32].mxu0 }
0x1354   : > { %v1664_v54 = vadd.f32 %v1663_v53, %v1601_v62  ;;  %v2951_v55 = vpop.f32.mrb[33].mxu0 }
0x1355   : > { %v1666_v25 = vpop.f32.mrb[34].mxu0 }
0x1356   : > { %v2952_v56 = vpop.f32.mrb[35].mxu0  ;;  %v1669_v57 = vadd.f32 %v1664_v54, %v1513_v27 }
0x1358   : > { %v1670_v58 = vsel %vm463_vm0, %v1669_v57, 0.0 }
0x1359   : > { %1671 = vadd.xlane.f32.xlu0 %v1670_v58 }
0x13e6   : > { %v1672_v59 = vpop.xlane.xlu0 %1671 }
0x13e7   : > { %v1673_v60 = vmul.f32 0.03125, %v1672_v59 }
0x13e9   : > { %v1674_v15 = vsub.f32 %v1669_v57, %v1673_v60 }
0x13eb   : > { %v1675_v61 = vmul.f32 %v1674_v15, %v1674_v15 }
0x13ed   : > { %v1676_v63 = vsel %vm463_vm0, %v1675_v61, 0.0 }
0x13ee   : > { %1677 = vadd.xlane.f32.xlu1 %v1676_v63 }
0x147b   : > { %v1678_v3 = vpop.xlane.xlu1 %1677 }
0x147c   : > { %v1679_v4 = vmul.f32 0.03125, %v1678_v3 }
0x147e   : > { %v1680_v5 = vadd.f32 1e-12, %v1679_v4 }
0x1480   : > { %3177 = vrsqrt.f32 %v1680_v5 }
0x148a   : > { %v3178_v7 = vpop.eup %3177 }
0x148b   : > { %v1682_v9 = vmul.f32 %v3178_v7, %v1674_v15 }
0x148d   : > { %v1687_v11 = vmul.f32 %v1686_v6, %v1682_v9 }
0x148f   : > { %v1692_v17 = vadd.f32 %v1691_v10, %v1687_v11 }
0x1491   : > { %v1693_v12 = vpack.c.bf16 %v1692_v17, %v1692_v17 }
0x1493   : > { %2958 = vmatmul.mubr.msk.bf16.vlgmr.msra.gmra.mrb[36].mxu1 %vm463_vm0, %v1693_v12 }
0x1494   : > { %2962 = vmatpush3.bf16.msra.mxu1 %v4040_v1  ;;  %2965 = vmatprep.mubr.msk.bf16.mxu1 %vm3502_vm1, %v3501_v8 }
0x1495   : > { %2963 = vmatprep.subr.bf16.mxu1 %v3501_v8 }
0x1498   : > { %2964 = vmatpush3.bf16.msra.mxu1 %v4044_v2 }
0x1499   : > { %2977 = vmatprep.subr.bf16.mxu1 %v3501_v8 }
0x149b   : > { %2966 = vmatmul.mubr.bf16.vlgmr.msra.gmra.mrb[40].mxu1 %v3508_v41 }
0x149c   : > { %2978 = vmatpush3.bf16.msra.mxu1 %v4040_v1  ;;  %2981 = vmatprep.mubr.msk.bf16.mxu1 %vm3502_vm1, %v3501_v8 }
0x149d   : > { %2979 = vmatprep.subr.bf16.mxu1 %v3501_v8 }
0x14a0   : > { %2980 = vmatpush3.bf16.msra.mxu1 %v4044_v2 }
0x14a1   : > { %2993 = vmatprep.subr.bf16.mxu1 %v3501_v8 }
0x1566   : > { %v1751_v14 = vpop.f32.mrb[36].mxu1 }
0x1567   : > { %v2959_v42 = vpop.f32.mrb[37].mxu1  ;;  %v4069_v18 = vadd.f32 %v1751_v14, %v1701_v47 }
0x1568   : > { %v1754_v51 = vpop.f32.mrb[38].mxu1 }
0x1569   : > { %v2960_v13 = vpop.f32.mrb[39].mxu1 }
0x156e   : > { %v1810_v19 = vpop.f32.mrb[40].mxu1 }
0x156f   : > { %v1816_v21 = vadd.f32 %v1810_v19, %v4069_v18  ;;  %v2967_v22 = vpop.f32.mrb[41].mxu1 }
0x1570   : > { %v1813_v24 = vpop.f32.mrb[42].mxu1 }
0x1571   : > { %3179 = vtanh.f32 %v1816_v21  ;;  %v2968_v26 = vpop.f32.mrb[43].mxu1  ;;  %v2731_v28 = vmul.f32 -1.442695, %v1816_v21 }
0x1573   : > { %3181 = vpow2.f32 %v2731_v28 }
0x157b   : > { %v3180_v27 = vpop.eup %3179 }
0x157c   : > { %1826 = vrot.lane.b32.xlu0 %v3180_v27, %s3507_s24 }
0x157d   : > { %v3182_v29 = vpop.eup %3181 }
0x157e   : > { %v1820_v30 = vadd.f32 1.0, %v3182_v29 }
0x1580   : > { %3183 = vrcp.f32 %v1820_v30 }
0x158a   : > { %v3184_v50 = vpop.eup %3183 }
0x158b   : > { %v1824_v31 = vmul.f32 0.0, %v3184_v50 }
0x15ee   : > { %v1827_v16 = vpop.permute.xlu0 %1826 }
0x15ef   : > { %v1829_v49 = vmul.f32 %v3184_v50, %v1827_v16 }
0x15f1   : > { %1831 = vrot.lane.b32.xlu1 %v1829_v49, %s3509_s27 }
0x1663   : > { %v1832_v32 = vpop.permute.xlu1 %1831 }
0x1664   : > { %v1834_v33 = vadd.f32 %v1832_v32, %v1824_v31 }
0x1666   : > { %3185 = vtanh.f32 %v1834_v33  ;;  %v1906_v25 = vrot.slane %v1834_v33, 7 }
0x1670   : > { %v3186_v34 = vpop.eup %3185 }
0x1671   : > { %1837 = vrot.lane.b32.xlu1 %v3186_v34, %s3507_s24 }
0x16e3   : > { %v1838_v35 = vpop.permute.xlu1 %1837 }
0x16e4   : > { %v4075_v36 = vmul.f32 %v3184_v50, %v1838_v35 }
0x16e6   : > { %v1847_v37 = vpack.c.bf16 %v4075_v36, %v4075_v36 }
0x16e8   : > { %1849 = vrot.lane.b32.xlu0 %v1847_v37, %s3509_s27 }
0x175a   : > { %v1850_v38 = vpop.permute.xlu0 %1849 }
0x175b   : > { %2974 = vmatmul.mubr.msk.bf16.vlgmr.msra.gmra.mrb[36].mxu0 %vm463_vm0, %v1850_v38 }
0x175c   : > { %2986 = vmatpush3.bf16.msra.mxu0 %v4040_v1  ;;  %2989 = vmatprep.mubr.msk.bf16.mxu0 %vm3502_vm1, %v3501_v8 }
0x175d   : > { %2987 = vmatprep.subr.bf16.mxu0 %v3501_v8 }
0x1760   : > { %2988 = vmatpush3.bf16.msra.mxu0 %v4044_v2 }
0x1761   : > { %3001 = vmatprep.subr.bf16.mxu0 %v3501_v8 }
0x182e   : > { %v1888_v39 = vpop.f32.mrb[36].mxu0 }
0x182f   : > { %v1895_v40 = vrot.slane %v1888_v39, 7  ;;  %v2975_v43 = vpop.f32.mrb[37].mxu0 }
0x1830   : > { %v1891_v44 = vpop.f32.mrb[38].mxu0 }
0x1831   : > { %v1897_v45 = vadd.f32 %v1895_v40, %v4069_v18  ;;  %v2976_v23 = vpop.f32.mrb[39].mxu0 }
0x1833   : > { %3187 = vtanh.f32 %v1897_v45  ;;  %v2733_v48 = vmul.f32 -1.442695, %v1897_v45 }
0x1835   : > { %3189 = vpow2.f32 %v2733_v48 }
0x183d   : > { %v3188_v46 = vpop.eup %3187 }
0x183e   : > { %1910 = vrot.lane.b32.xlu1 %v3188_v46, %s3507_s24 }
0x183f   : > { %v3190_v52 = vpop.eup %3189 }
0x1840   : > { %v1901_v62 = vadd.f32 1.0, %v3190_v52 }
0x1842   : > { %3191 = vrcp.f32 %v1901_v62 }
0x184c   : > { %v3192_v53 = vpop.eup %3191 }
0x184d   : > { %v1908_v56 = vmul.f32 %v3192_v53, %v1906_v25 }
0x18b0   : > { %v1911_v54 = vpop.permute.xlu1 %1910 }
0x18b1   : > { %v1913_v55 = vmul.f32 %v3192_v53, %v1911_v54 }
0x18b3   : > { %1915 = vrot.lane.b32.xlu0 %v1913_v55, %s3509_s27 }
0x1925   : > { %v1916_v57 = vpop.permute.xlu0 %1915 }
0x1926   : > { %v1918_v58 = vadd.f32 %v1916_v57, %v1908_v56 }
0x1928   : > { %3193 = vtanh.f32 %v1918_v58  ;;  %v1992_v42 = vrot.slane %v1918_v58, 7 }
0x1932   : > { %v3194_v59 = vpop.eup %3193 }
0x1933   : > { %1921 = vrot.lane.b32.xlu1 %v3194_v59, %s3507_s24 }
0x19a5   : > { %v1922_v60 = vpop.permute.xlu1 %1921 }
0x19a6   : > { %v4091_v15 = vmul.f32 %v3192_v53, %v1922_v60 }
0x19a8   : > { %v1931_v61 = vpack.c.bf16 %v4091_v15, %v4091_v15 }
0x19aa   : > { %v1933_v63 = vshrl.u32 %v1931_v61, 16 }
0x19ac   : > { %1935 = vrot.lane.b32.xlu0 %v1933_v63, %s3509_s27 }
0x1a1e   : > { %v1936_v20 = vpop.permute.xlu0 %1935 }
0x1a1f   : > { %2982 = vmatmul.mubr.msk.bf16.vlgmr.msra.gmra.mrb[44].mxu1 %vm463_vm0, %v1936_v20 }
0x1a20   : > { %2994 = vmatpush3.bf16.msra.mxu1 %v4040_v1  ;;  %2997 = vmatprep.mubr.msk.bf16.mxu1 %vm3502_vm1, %v3501_v8 }
0x1a21   : > { %2995 = vmatprep.subr.bf16.mxu1 %v3501_v8 }
0x1a24   : > { %2996 = vmatpush3.bf16.msra.mxu1 %v4044_v2 }
0x1a25   : > { %3009 = vmatprep.subr.bf16.mxu1 %v3501_v8 }
0x1af2   : > { %v1974_v0 = vpop.f32.mrb[44].mxu1 }
0x1af3   : > { %v1981_v3 = vrot.slane %v1974_v0, 6  ;;  %v2983_v4 = vpop.f32.mrb[45].mxu1 }
0x1af4   : > { %v1977_v5 = vpop.f32.mrb[46].mxu1 }
0x1af5   : > { %v1983_v6 = vadd.f32 %v1981_v3, %v4069_v18  ;;  %v2984_v7 = vpop.f32.mrb[47].mxu1 }
0x1af7   : > { %3195 = vtanh.f32 %v1983_v6  ;;  %v2735_v10 = vmul.f32 -1.442695, %v1983_v6 }
0x1af9   : > { %3197 = vpow2.f32 %v2735_v10 }
0x1b01   : > { %v3196_v9 = vpop.eup %3195 }
0x1b02   : > { %1996 = vrot.lane.b32.xlu1 %v3196_v9, %s3507_s24 }
0x1b03   : > { %v3198_v11 = vpop.eup %3197 }
0x1b04   : > { %v1987_v17 = vadd.f32 1.0, %v3198_v11 }
0x1b06   : > { %3199 = vrcp.f32 %v1987_v17 }
0x1b10   : > { %v3200_v12 = vpop.eup %3199 }
0x1b11   : > { %v1994_v51 = vmul.f32 %v3200_v12, %v1992_v42 }
0x1b74   : > { %v1997_v41 = vpop.permute.xlu1 %1996 }
0x1b75   : > { %v1999_v14 = vmul.f32 %v3200_v12, %v1997_v41 }
0x1b77   : > { %2001 = vrot.lane.b32.xlu0 %v1999_v14, %s3509_s27 }
0x1be9   : > { %v2002_v47 = vpop.permute.xlu0 %2001 }
0x1bea   : > { %v2004_v13 = vadd.f32 %v2002_v47, %v1994_v51 }
0x1bec   : > { %3201 = vtanh.f32 %v2004_v13  ;;  %v2077_v39 = vrot.slane %v2004_v13, 7 }
0x1bf6   : > { %v3202_v19 = vpop.eup %3201 }
0x1bf7   : > { %2007 = vrot.lane.b32.xlu1 %v3202_v19, %s3507_s24 }
0x1c69   : > { %v2008_v21 = vpop.permute.xlu1 %2007 }
0x1c6a   : > { %v4107_v22 = vmul.f32 %v3200_v12, %v2008_v21 }
0x1c6c   : > { %v2017_v24 = vpack.c.bf16 %v4107_v22, %v4107_v22 }
0x1c6e   : > { %v2019_v26 = vrot.slane %v2017_v24, 1 }
0x1c70   : > { %2020 = vrot.lane.b32.xlu0 %v2019_v26, %s3509_s27 }
0x1ce2   : > { %v2021_v27 = vpop.permute.xlu0 %2020 }
0x1ce3   : > { %2990 = vmatmul.mubr.msk.bf16.vlgmr.msra.gmra.mrb[40].mxu0 %vm463_vm0, %v2021_v27 }
0x1ce4   : > { %3002 = vmatpush3.bf16.msra.mxu0 %v4040_v1  ;;  %3005 = vmatprep.mubr.msk.bf16.mxu0 %vm3502_vm1, %v3501_v8 }
0x1ce5   : > { %3003 = vmatprep.subr.bf16.mxu0 %v3501_v8 }
0x1ce8   : > { %3004 = vmatpush3.bf16.msra.mxu0 %v4044_v2 }
0x1ce9   : > { %3017 = vmatprep.subr.bf16.mxu0 %v3501_v8 }
0x1db6   : > { %v2059_v28 = vpop.f32.mrb[40].mxu0 }
0x1db7   : > { %v2066_v29 = vrot.slane %v2059_v28, 5  ;;  %v2991_v30 = vpop.f32.mrb[41].mxu0 }
0x1db8   : > { %v2062_v50 = vpop.f32.mrb[42].mxu0 }
0x1db9   : > { %v2068_v16 = vadd.f32 %v2066_v29, %v4069_v18  ;;  %v2992_v49 = vpop.f32.mrb[43].mxu0 }
0x1dbb   : > { %3203 = vtanh.f32 %v2068_v16  ;;  %v2737_v32 = vmul.f32 -1.442695, %v2068_v16 }
0x1dbd   : > { %3205 = vpow2.f32 %v2737_v32 }
0x1dc5   : > { %v3204_v31 = vpop.eup %3203 }
0x1dc6   : > { %2081 = vrot.lane.b32.xlu1 %v3204_v31, %s3507_s24 }
0x1dc7   : > { %v3206_v33 = vpop.eup %3205 }
0x1dc8   : > { %v2072_v34 = vadd.f32 1.0, %v3206_v33 }
0x1dca   : > { %3207 = vrcp.f32 %v2072_v34 }
0x1dd4   : > { %v3208_v35 = vpop.eup %3207 }
0x1dd5   : > { %v2079_v40 = vmul.f32 %v3208_v35, %v2077_v39 }
0x1e38   : > { %v2082_v37 = vpop.permute.xlu1 %2081 }
0x1e39   : > { %v2084_v38 = vmul.f32 %v3208_v35, %v2082_v37 }
0x1e3b   : > { %2086 = vrot.lane.b32.xlu0 %v2084_v38, %s3509_s27 }
0x1ead   : > { %v2087_v43 = vpop.permute.xlu0 %2086 }
0x1eae   : > { %v2089_v44 = vadd.f32 %v2087_v43, %v2079_v40 }
0x1eb0   : > { %3209 = vtanh.f32 %v2089_v44  ;;  %v2164_v4 = vrot.slane %v2089_v44, 7 }
0x1eba   : > { %v3210_v45 = vpop.eup %3209 }
0x1ebb   : > { %2092 = vrot.lane.b32.xlu1 %v3210_v45, %s3507_s24 }
0x1f2d   : > { %v2093_v23 = vpop.permute.xlu1 %2092 }
0x1f2e   : > { %v4123_v46 = vmul.f32 %v3208_v35, %v2093_v23 }
0x1f30   : > { %v2102_v48 = vpack.c.bf16 %v4123_v46, %v4123_v46 }
0x1f32   : > { %v2104_v52 = vshrl.u32 %v2102_v48, 16 }
0x1f34   : > { %v2106_v62 = vrot.slane %v2104_v52, 1 }
0x1f36   : > { %2107 = vrot.lane.b32.xlu0 %v2106_v62, %s3509_s27 }
0x1fa8   : > { %v2108_v53 = vpop.permute.xlu0 %2107 }
0x1fa9   : > { %2998 = vmatmul.mubr.msk.bf16.vlgmr.msra.gmra.mrb[48].mxu1 %vm463_vm0, %v2108_v53 }
0x1faa   : > { %3010 = vmatpush3.bf16.msra.mxu1 %v4040_v1  ;;  %3013 = vmatprep.mubr.msk.bf16.mxu1 %vm3502_vm1, %v3501_v8 }
0x1fab   : > { %3011 = vmatprep.subr.bf16.mxu1 %v3501_v8 }
0x1fae   : > { %3012 = vmatpush3.bf16.msra.mxu1 %v4044_v2 }
0x207c   : > { %v2146_v54 = vpop.f32.mrb[48].mxu1 }
0x207d   : > { %v2153_v55 = vrot.slane %v2146_v54, 4  ;;  %v2999_v25 = vpop.f32.mrb[49].mxu1 }
0x207e   : > { %v2149_v56 = vpop.f32.mrb[50].mxu1 }
0x207f   : > { %v2155_v57 = vadd.f32 %v2153_v55, %v4069_v18  ;;  %v3000_v58 = vpop.f32.mrb[51].mxu1 }
0x2081   : > { %3211 = vtanh.f32 %v2155_v57  ;;  %v2739_v60 = vmul.f32 -1.442695, %v2155_v57 }
0x2083   : > { %3213 = vpow2.f32 %v2739_v60 }
0x208b   : > { %v3212_v59 = vpop.eup %3211 }
0x208c   : > { %2168 = vrot.lane.b32.xlu1 %v3212_v59, %s3507_s24 }
0x208d   : > { %v3214_v61 = vpop.eup %3213 }
0x208e   : > { %v2159_v63 = vadd.f32 1.0, %v3214_v61 }
0x2090   : > { %3215 = vrcp.f32 %v2159_v63 }
0x209a   : > { %v3216_v20 = vpop.eup %3215 }
0x209b   : > { %v2166_v5 = vmul.f32 %v3216_v20, %v2164_v4 }
0x20fe   : > { %v2169_v0 = vpop.permute.xlu1 %2168 }
0x20ff   : > { %v2171_v3 = vmul.f32 %v3216_v20, %v2169_v0 }
0x2101   : > { %2173 = vrot.lane.b32.xlu0 %v2171_v3, %s3509_s27 }
0x2173   : > { %v2174_v6 = vpop.permute.xlu0 %2173 }
0x2174   : > { %v2176_v7 = vadd.f32 %v2174_v6, %v2166_v5 }
0x2176   : > { %3217 = vtanh.f32 %v2176_v7 }
0x2180   : > { %v3218_v9 = vpop.eup %3217 }
0x2181   : > { %2179 = vrot.lane.b32.xlu1 %v3218_v9, %s3507_s24 }
0x21f3   : > { %v2180_v10 = vpop.permute.xlu1 %2179 }
0x21f4   : > { %v4138_v11 = vmul.f32 %v3216_v20, %v2180_v10 }
0x21f6   : > { %v2189_v17 = vpack.c.bf16 %v4138_v11, %v4138_v11 }
0x21f8   : > { %v2191_v12 = vrot.slane %v2189_v17, 2 }
0x21fa   : > { %2192 = vrot.lane.b32.xlu0 %v2191_v12, %s3509_s27 }
0x226c   : > { %v2193_v41 = vpop.permute.xlu0 %2192 }
0x226d   : > { %3006 = vmatmul.mubr.msk.bf16.vlgmr.msra.gmra.mrb[44].mxu0 %vm463_vm0, %v2193_v41 }
0x226e   : > { %3018 = vmatpush3.bf16.msra.mxu0 %v4040_v1  ;;  %3021 = vmatprep.mubr.msk.bf16.mxu0 %vm3502_vm1, %v3501_v8 }
0x226f   : > { %3019 = vmatprep.subr.bf16.mxu0 %v3501_v8 }
0x2272   : > { %3020 = vmatpush3.bf16.msra.mxu0 %v4044_v2  ;;  %v2249_v2 = vrot.slane %v2176_v7, 7 }
0x2340   : > { %v2231_v14 = vpop.f32.mrb[44].mxu0 }
0x2341   : > { %v2238_v42 = vrot.slane %v2231_v14, 3  ;;  %v3007_v51 = vpop.f32.mrb[45].mxu0 }
0x2342   : > { %v2234_v47 = vpop.f32.mrb[46].mxu0 }
0x2343   : > { %v2240_v13 = vadd.f32 %v2238_v42, %v4069_v18  ;;  %v3008_v19 = vpop.f32.mrb[47].mxu0 }
0x2345   : > { %3219 = vtanh.f32 %v2240_v13  ;;  %v2741_v24 = vmul.f32 -1.442695, %v2240_v13 }
0x2347   : > { %3221 = vpow2.f32 %v2741_v24 }
0x234f   : > { %v3220_v21 = vpop.eup %3219 }
0x2350   : > { %2253 = vrot.lane.b32.xlu1 %v3220_v21, %s3507_s24 }
0x2351   : > { %v3222_v1 = vpop.eup %3221 }
0x2352   : > { %v2244_v26 = vadd.f32 1.0, %v3222_v1 }
0x2354   : > { %3223 = vrcp.f32 %v2244_v26 }
0x235e   : > { %v3224_v27 = vpop.eup %3223 }
0x235f   : > { %v2251_v29 = vmul.f32 %v3224_v27, %v2249_v2 }
0x23c2   : > { %v2254_v8 = vpop.permute.xlu1 %2253 }
0x23c3   : > { %v2256_v28 = vmul.f32 %v3224_v27, %v2254_v8 }
0x23c5   : > { %2258 = vrot.lane.b32.xlu0 %v2256_v28, %s3509_s27 }
0x2437   : > { %v2259_v30 = vpop.permute.xlu0 %2258 }
0x2438   : > { %v2261_v50 = vadd.f32 %v2259_v30, %v2251_v29 }
0x243a   : > { %3225 = vtanh.f32 %v2261_v50  ;;  %v2336_v55 = vrot.slane %v2261_v50, 7 }
0x2444   : > { %v3226_v16 = vpop.eup %3225 }
0x2445   : > { %2264 = vrot.lane.b32.xlu1 %v3226_v16, %s3507_s24 }
0x24b7   : > { %v2265_v49 = vpop.permute.xlu1 %2264 }
0x24b8   : > { %v2267_v31 = vmul.f32 %v3224_v27, %v2265_v49 }
0x24ba   : > { %v2274_v32 = vpack.c.bf16 %v2267_v31, %v2267_v31 }
0x24bc   : > { %v2276_v33 = vshrl.u32 %v2274_v32, 16 }
0x24be   : > { %v2278_v34 = vrot.slane %v2276_v33, 2 }
0x24c0   : > { %2279 = vrot.lane.b32.xlu0 %v2278_v34, %s3509_s27 }
0x2532   : > { %v2280_v35 = vpop.permute.xlu0 %2279 }
0x2533   : > { %3014 = vmatmul.mubr.msk.bf16.vlgmr.msra.gmra.mrb[52].mxu1 %vm463_vm0, %v2280_v35 }
0x2606   : > { %v2318_v37 = vpop.f32.mrb[52].mxu1 }
0x2607   : > { %v2325_v38 = vrot.slane %v2318_v37, 2  ;;  %v3015_v39 = vpop.f32.mrb[53].mxu1 }
0x2608   : > { %v2321_v40 = vpop.f32.mrb[54].mxu1 }
0x2609   : > { %v2327_v43 = vadd.f32 %v2325_v38, %v4069_v18  ;;  %v3016_v44 = vpop.f32.mrb[55].mxu1 }
0x260b   : > { %3227 = vtanh.f32 %v2327_v43  ;;  %v2743_v23 = vmul.f32 -1.442695, %v2327_v43 }
0x260d   : > { %3229 = vpow2.f32 %v2743_v23 }
0x2615   : > { %v3228_v45 = vpop.eup %3227 }
0x2616   : > { %2340 = vrot.lane.b32.xlu1 %v3228_v45, %s3507_s24 }
0x2617   : > { %v3230_v48 = vpop.eup %3229 }
0x2618   : > { %v2331_v52 = vadd.f32 1.0, %v3230_v48 }
0x261a   : > { %3231 = vrcp.f32 %v2331_v52 }
0x2624   : > { %v3232_v62 = vpop.eup %3231 }
0x2625   : > { %v2338_v25 = vmul.f32 %v3232_v62, %v2336_v55 }
0x2688   : > { %v2341_v53 = vpop.permute.xlu1 %2340 }
0x2689   : > { %v2343_v54 = vmul.f32 %v3232_v62, %v2341_v53 }
0x268b   : > { %2345 = vrot.lane.b32.xlu0 %v2343_v54, %s3509_s27 }
0x26fd   : > { %v2346_v56 = vpop.permute.xlu0 %2345 }
0x26fe   : > { %v2348_v57 = vadd.f32 %v2346_v56, %v2338_v25 }
0x2700   : > { %3233 = vtanh.f32 %v2348_v57 }
0x270a   : > { %v3234_v58 = vpop.eup %3233 }
0x270b   : > { %2351 = vrot.lane.b32.xlu1 %v3234_v58, %s3507_s24 }
0x277d   : > { %v2352_v59 = vpop.permute.xlu1 %2351 }
0x277e   : > { %v2354_v60 = vmul.f32 %v3232_v62, %v2352_v59 }
0x2780   : > { %v2361_v61 = vpack.c.bf16 %v2354_v60, %v2354_v60 }
0x2782   : > { %v2363_v63 = vrot.slane %v2361_v61, 3 }
0x2784   : > { %2364 = vrot.lane.b32.xlu0 %v2363_v63, %s3509_s27 }
0x27f6   : > { %v2365_v20 = vpop.permute.xlu0 %2364 }
0x27f7   : > { %3022 = vmatmul.mubr.msk.bf16.vlgmr.msra.gmra.mrb[48].mxu0 %vm463_vm0, %v2365_v20 }
0x28ca   : > { %v2403_v0 = vpop.f32.mrb[48].mxu0 }
0x28cb   : > { %v2410_v3 = vrot.slane %v2403_v0, 1  ;;  %v3023_v4 = vpop.f32.mrb[49].mxu0 }
0x28cc   : > { %v2406_v5 = vpop.f32.mrb[50].mxu0 }
0x28cd   : > { %v2412_v6 = vadd.f32 %v2410_v3, %v4069_v18  ;;  %v3024_v7 = vpop.f32.mrb[51].mxu0  ;;  %v2421_v18 = vrot.slane %v2348_v57, 7 }
0x28cf   : > { %3235 = vtanh.f32 %v2412_v6  ;;  %v2745_v10 = vmul.f32 -1.442695, %v2412_v6 }
0x28d1   : > { %3237 = vpow2.f32 %v2745_v10 }
0x28d9   : > { %v3236_v9 = vpop.eup %3235 }
0x28da   : > { %2425 = vrot.lane.b32.xlu1 %v3236_v9, %s3507_s24 }
0x28db   : > { %v3238_v17 = vpop.eup %3237 }
0x28dc   : > { %v2416_v12 = vadd.f32 1.0, %v3238_v17 }
0x28de   : > { %3239 = vrcp.f32 %v2416_v12 }
0x28e8   : > { %v3240_v41 = vpop.eup %3239 }
0x28e9   : > { %v2423_v51 = vmul.f32 %v3240_v41, %v2421_v18 }
0x294c   : > { %v2426_v14 = vpop.permute.xlu1 %2425 }
0x294d   : > { %v2428_v42 = vmul.f32 %v3240_v41, %v2426_v14 }
0x294f   : > { %2430 = vrot.lane.b32.xlu0 %v2428_v42, %s3509_s27 }
0x2953   : > { %1842 = vrot.lane.b32.xlu0 %v4075_v36, %s3509_s27 }
0x2957   : > { %2097 = vrot.lane.b32.xlu0 %v4123_v46, %s3509_s27 }
0x295b   : > { %2269 = vrot.lane.b32.xlu0 %v2267_v31, %s3509_s27 }
0x29c1   : > { %v2431_v47 = vpop.permute.xlu0 %2430 }
0x29c2   : > { %v2433_v13 = vadd.f32 %v2431_v47, %v2423_v51 }
0x29c4   : > { %3241 = vtanh.f32 %v2433_v13 }
0x29c5   : > { %v1843_v19 = vpop.permute.xlu0 %1842 }
0x29c6   : > { %1846 = vst.msk [vmem:[%s4171_s28] sm:$0x1] %vm1845_vm6, %v1843_v19 }
0x29c9   : > { %v2098_v36 = vpop.permute.xlu0 %2097 }
0x29ca   : > { %2101 = vst.msk [vmem:[%s4171_s28] sm:$0x8] %vm2100_vm7, %v2098_v36 }
0x29cd   : > { %v2270_v46 = vpop.permute.xlu0 %2269 }
0x29ce   : > { %v3242_v21 = vpop.eup %3241  ;;  %2273 = vst.msk [vmem:[%s4171_s28] sm:$0x20] %vm2272_vm8, %v2270_v46 }
0x29cf   : > { %2436 = vrot.lane.b32.xlu1 %v3242_v21, %s3507_s24  ;;  %s2457_s24 = sand.u32 1, %s3594_s21  }
0x29d0   : > { %s4222_s3 = scalar_lea.sflag [#allocation12], %s2457_s24 }
0x29d3   : > { %1926 = vrot.lane.b32.xlu1 %v4091_v15, %s3509_s27 }
0x29d7   : > { %2012 = vrot.lane.b32.xlu1 %v4107_v22, %s3509_s27 }
0x29db   : > { %2184 = vrot.lane.b32.xlu1 %v4138_v11, %s3509_s27 }
0x29df   : > { %2356 = vrot.lane.b32.xlu1 %v2354_v60, %s3509_s27 }
0x2a41   : > { %v2437_v24 = vpop.permute.xlu1 %2436 }
0x2a42   : > { %v2439_v1 = vmul.f32 %v3240_v41, %v2437_v24 }
0x2a44   : > { %2441 = vrot.lane.b32.xlu0 %v2439_v1, %s3509_s27  ;;  %s4201_s27 = scalar_lea.hbm %s4323_s10, %s2748_s30 }
0x2a45   : > { %v1927_v15 = vpop.permute.xlu1 %1926 }
0x2a46   : > { %1930 = vst.msk [vmem:[%s4171_s28] sm:$0x2] %vm1929_vm9, %v1927_v15 }
0x2a48   : > { %2448 = vrot.lane.b32.xlu0 %v2433_v13, %s3504_s17  ;;  %s2474_s17 = sshll.u32 %s4171_s28, 4  ;;  %s4210_s17 = int_to_ptr.vmem [resolvable:$true] %s2474_s17 }
0x2a49   : > { %v2013_v22 = vpop.permute.xlu1 %2012 }
0x2a4a   : > { %2016 = vst.msk [vmem:[%s4171_s28] sm:$0x4] %vm2015_vm10, %v2013_v22 }
0x2a4d   : > { %v2185_v11 = vpop.permute.xlu1 %2184 }
0x2a4e   : > { %2188 = vst.msk [vmem:[%s4171_s28] sm:$0x10] %vm2187_vm11, %v2185_v11 }
0x2a51   : > { %v2357_v26 = vpop.permute.xlu1 %2356 }
0x2a52   : > { %2360 = vst.msk [vmem:[%s4171_s28] sm:$0x40] %vm2359_vm12, %v2357_v26 }
0x2ab6   : > { %v2442_v27 = vpop.permute.xlu0 %2441 }
0x2ab7   : > { %2445 = vst.msk [vmem:[%s4171_s28] sm:$0x80] %vm2444_vm13, %v2442_v27  ;;  %2446 = vst.msk [vmem:[%s453_s22 - $0x7] sm:$0x80] %vm2444_vm13, %v2442_v27  ;;  %s3363_s28 = scalar_lea.vmem %s3362_s12, 32 }
0x2ab8   : > { %p3365_p7 = scmp.lt.s32.totalorder %s3363_s28, %s3357_s4 }
0x2aba   : > { %p3366_p10 = por %p3365_p7, %p3364_p3 }
0x2abc   : > { %p3367_p13 = pnand %p3366_p10, %p3360_p8 }
0x2abe   : > { %3370 = shalt.err (!%p3367_p13)
}
0x2abf   : > { %s3371_s24 = scalar_lea.hbm %s4201_s27, 16  ;;  %s3375_s23 = scalar_lea.hbm %s4323_s10, 32 }
0x2ac0   : > { %p3372_p5 = scmp.ne.s32.totalorder %s4201_s27, %s3371_s24  ;;  %p3376_p9 = scmp.lt.u32.totalorder %s4201_s27, %s4323_s10 }
0x2ac1   : > { %p3377_p12 = scmp.lt.u32.totalorder %s3375_s23, %s3371_s24  ;;  %p3379_p1 = scmp.lt.u32.totalorder %s3371_s24, %s4201_s27 }
0x2ac2   : > { %p3373_p0 = pnand %p3372_p5, %p3713_p6 }
0x2ac3   : > { %p3378_p2 = por %p3377_p12, %p3376_p9 }
0x2ac4   : > { %p3374_p11 = pneg %p3373_p0 }
0x2ac5   : > { %p3380_p4 = por %p3379_p1, %p3378_p2 }
0x2ac7   : > { %p3381_p8 = pnand %p3380_p4, %p3374_p11 }
0x2ac9   : > { %3384 = shalt.err (!%p3381_p8)
}
0x2aca   : > { %3040 = dma.vmem_to_hbm [thread:$0]  (%p3713_p6), %s4203_s1, 16, %s4201_s27, %s4222_s3  }
0x2acb   : > { %s2453_s4 = scalar_lea.sflag [#allocation4], %s3758_s15  ;;  %s3385_s0 = scalar_lea.vmem %s4210_s17, 128 }
0x2acc   : > { %p3386_p3 = scmp.ne.s32.totalorder %s4210_s17, %s3385_s0  ;;  %s3511_s12 = smov [#allocation10]  }
0x2acd   : > { %s3389_s28 = sshll.u32 %s3511_s12, 4  ;;  %s3390_s28 = int_to_ptr.vmem [resolvable:$false] %s3389_s28 }
0x2ace   : > { %p3387_p7 = pnand %p3386_p3, %p3713_p6  ;;  %s3391_s24 = scalar_lea.vmem %s3390_s28, 256 }
0x2acf   : > { %p3392_p13 = scmp.lt.s32.totalorder %s4210_s17, %s3390_s28  ;;  %p3393_p5 = scmp.lt.s32.totalorder %s3391_s24, %s3385_s0 }
0x2ad0   : > { %p3388_p10 = pneg %p3387_p7 }
0x2ad1   : > { %p3394_p0 = por %p3393_p5, %p3392_p13 }
0x2ad3   : > { %p3395_p11 = pnand %p3394_p0, %p3388_p10 }
0x2ad5   : > { %3398 = shalt.err (!%p3395_p11)
}
0x2ad6   : > { %s3399_s1 = scalar_lea.hbm %s4208_s29, 128  ;;  %s3403_s22 = scalar_lea.hbm %s4322_s9, 256 }
0x2ad7   : > { %p3400_p9 = scmp.ne.s32.totalorder %s4208_s29, %s3399_s1  ;;  %p3404_p1 = scmp.lt.u32.totalorder %s4208_s29, %s4322_s9 }
0x2ad8   : > { %p3405_p4 = scmp.lt.u32.totalorder %s3403_s22, %s3399_s1  ;;  %p3407_p3 = scmp.lt.u32.totalorder %s3399_s1, %s4208_s29 }
0x2ad9   : > { %p3401_p12 = pnand %p3400_p9, %p3713_p6 }
0x2ada   : > { %p3406_p8 = por %p3405_p4, %p3404_p1 }
0x2adb   : > { %p3402_p2 = pneg %p3401_p12 }
0x2adc   : > { %p3408_p7 = por %p3407_p3, %p3406_p8 }
0x2ade   : > { %p3409_p10 = pnand %p3408_p7, %p3402_p2 }
0x2ae0   : > { %3412 = shalt.err (!%p3409_p10)
}
0x2ae1   : > { %3039 = dma.vmem_to_hbm [thread:$0]  (%p3713_p6), %s4210_s17, 128, %s4208_s29, %s2453_s4   ;;  %v2449_v8 = vpop.permute.xlu0 %2448 }
0x2ae2   : > { %s4363_s13 = scalar_lea.vmem [#allocation13], %s3758_s15  ;;  %s3413_s0 = scalar_lea.vmem %s4220_s25, 16 }
0x2ae3   : > { %2451 = vst.msk [vmem:[%s4363_s13 - $0x7] sm:$0x80] %vm2444_vm13, %v2449_v8  ;;  %p3414_p13 = scmp.ne.s32.totalorder %s4220_s25, %s3413_s0  ;;  %s3512_s12 = smov [#allocation13]  }
0x2ae4   : > { %s3417_s28 = sshll.u32 %s3512_s12, 4  ;;  %s3418_s28 = int_to_ptr.vmem [resolvable:$false] %s3417_s28 }
0x2ae5   : > { %p3415_p5 = pnand %p3414_p13, %p3713_p6  ;;  %s3419_s24 = scalar_lea.vmem %s3418_s28, 32 }
0x2ae6   : > { %p3420_p11 = scmp.lt.s32.totalorder %s4220_s25, %s3418_s28  ;;  %p3421_p9 = scmp.lt.s32.totalorder %s3419_s24, %s3413_s0 }
0x2ae7   : > { %p3416_p0 = pneg %p3415_p5 }
0x2ae8   : > { %p3422_p12 = por %p3421_p9, %p3420_p11 }
0x2aea   : > { %p3423_p2 = pnand %p3422_p12, %p3416_p0 }
0x2aec   : > { %3426 = shalt.err (!%p3423_p2)
}
0x2aed   : > { %s3427_s15 = scalar_lea.hbm %s4218_s2, 16  ;;  %s3431_s4 = scalar_lea.hbm %s4362_s14, 32 }
0x2aee   : > { %p3428_p1 = scmp.ne.s32.totalorder %s4218_s2, %s3427_s15  ;;  %p3432_p3 = scmp.lt.u32.totalorder %s4218_s2, %s4362_s14 }
0x2aef   : > { %p3433_p7 = scmp.lt.u32.totalorder %s3431_s4, %s3427_s15  ;;  %p3435_p13 = scmp.lt.u32.totalorder %s3427_s15, %s4218_s2 }
0x2af0   : > { %p3429_p4 = pnand %p3428_p1, %p3713_p6 }
0x2af1   : > { %p3434_p10 = por %p3433_p7, %p3432_p3 }
0x2af2   : > { %p3430_p8 = pneg %p3429_p4 }
0x2af3   : > { %p3436_p5 = por %p3435_p13, %p3434_p10 }
0x2af5   : > { %p3437_p0 = pnand %p3436_p5, %p3430_p8 }
0x2af7   : > { %3440 = shalt.err (!%p3437_p0)
}
0x2af8   : > { %3041 = dma.vmem_to_hbm [thread:$0]  (%p3713_p6), %s4220_s25, 16, %s4218_s2, %s4222_s3  }
0x2af9 PF: > { %s4364_s30 = sld [smem:[#allocation19_spill]]  ;;  %s4365_s22 = sld [smem:[#allocation20_spill]] }
0x2afa   : > { %p4367_p9 = scmp.ge.s32.totalorder %s3491_s20, 2 }
0x2aff   : > { %s2512_s23 = sand.u32 1, %s4364_s30   ;;  %p4366_p11 = scmp.ne.s32.totalorder %s4365_s22, 0 }
0x2b00   : > { %s2513_s21 = scalar_lea.sflag [#allocation4], %s2512_s23 }
0x2b01   : > { %p3060_p12 = pnand %p4367_p9, %p4366_p11 }
0x2b03   : > { %3470 = dma.done.wait (!%p3060_p12), %s2513_s21, 128  }
0x2b04   : > { %3472 = vsyncadd (!%p3060_p12), %s2513_s21, 4294967168  ;;  %s4368_s13 = sadd.s32 4294967294, %s3491_s20  }
0x2b05   : > { %s2521_s0 = sand.u32 1, %s4368_s13  }
0x2b06   : > { %s2522_s12 = scalar_lea.sflag [#allocation12], %s2521_s0 }
0x2b07   : > { %3474 = dma.done.wait (!%p3060_p12), %s2522_s12, 32  }
0x2b08   : > { %3476 = vsyncadd (!%p3060_p12), %s2522_s12, 4294967264  ;;  %p30_p6 = scmp.ge.s32.totalorder %s3699_s11, 4   ;;  %s4369_s17 = smov %s3483_s18 }
0x2b09   : > { %s4370_s18 = smov %s3487_s19  ;;  %s4371_s19 = smov %s3709_s16 }
0x2b0a   : > { %s4372_s20 = smov %s3699_s11  ;;  %32 = sbr.rel (!%p30_p6) target bundleno = 16 (0x10), region = 152 }
0x2b11   :  { %2534 = vsyncpa [#allocation3], 1 }
0x2b12   :  { %2536 = vsyncpa [#allocation3 + $0x1], 1 }
0x2b13   :  { %2537 = vsyncpa [#allocation6], 1 }
0x2b14   :  { %2538 = vsyncpa [#allocation9], 1 }
0x2b15   :  { %2539 = vsyncpa [#allocation4], 1 }
0x2b16   :  { %2541 = vsyncpa [#allocation4 + $0x1], 1 }
0x2b17   :  { %2542 = vsyncpa [#allocation12], 1 }
0x2b18   :  { %2544 = vsyncpa [#allocation12 + $0x1], 1 }

</bundles_post_ra>
